<compile_context>
chip_gen: v5e
topology: v5e:2x2
jax: 0.10.0
libtpu: 0.0.40
codegen_flags: <defaults>
</compile_context>

<pallas_src>
import math
import functools

import jax
import jax.numpy as jnp
from jax.experimental import pallas as pl
from jax.experimental.pallas import tpu as pltpu


# -----------------------------------------------------------------------------
# Fused kernel: per-batch QKV projection (resident), kNN gather, fc_delta,
# fc_gamma, softmax over K, weighted sum, fc2 + residual.
# -----------------------------------------------------------------------------
def attn_kernel(feat_ref, idx_ref, rel_ref,
                wqkv_ref, bqkv_ref, wsq_ref, wsmall_ref, w2_ref, b2_ref,
                res_ref, attn_ref, kv_ref, *, n_chunk):
    T, K = idx_ref.shape                 # N-tile rows, neighbors
    N, d_points = feat_ref.shape         # full per-batch rows, d_points
    d_model = wsq_ref.shape[-1]

    # ---- once per batch index: fused fc1+QKV projection of ALL N points into
    #      persistent VMEM scratch (q|k|v never round-trip through HBM) -------
    @pl.when(pl.program_id(1) == 0)
    def _():
        kv_ref[...] = (jnp.dot(feat_ref[...], wqkv_ref[...],
                               preferred_element_type=jnp.float32)
                       + bqkv_ref[...])                       # [N, 3*dm]

    n0 = pl.program_id(1) * T
    if T % 8 == 0:
        n0 = pl.multiple_of(n0, 8)
    feat_tile = feat_ref[pl.ds(n0, T), :]                     # [T, dp] (pre)
    q = kv_ref[pl.ds(n0, T), :][:, :d_model]                  # [T, dm]

    # ---- gather k/v rows for this tile's kNN indices: chunked one-hot matmul
    #      against the VMEM-resident projections.  Chunking over N bounds the
    #      one-hot temporary so it no longer limits the tile size.
    # TODO(synk): replace with a native in-kernel VMEM row gather once Mosaic
    # supports arbitrary-row gathers; the one-hot costs O(T*K*N*dm) extra
    # MXU FLOPs (it is exact, since each row sums exactly one 1.0*value term).
    idx = idx_ref[...]                                        # [T, K] int32
    kvg = None
    for c0 in range(0, N, n_chunk):
        oh = (idx[:, :, None] ==
              (c0 + jax.lax.broadcasted_iota(jnp.int32, (T, K, n_chunk), 2))
              ).astype(jnp.float32).reshape(T * K, n_chunk)
        part = jnp.dot(oh, kv_ref[c0:c0 + n_chunk, :][:, d_model:],
                       preferred_element_type=jnp.float32)    # [T*K, 2*dm]
        kvg = part if kvg is None else kvg + part
    kg = kvg[:, :d_model]                                     # gathered k
    vg = kvg[:, d_model:]                                     # gathered v

    # ---- fc_delta: Linear(3, dm) as three VPU FMAs, ReLU, Linear(dm, dm) ----
    rel = rel_ref[...]                                        # [T*K, 3]
    h = (rel[:, 0:1] * wsmall_ref[0:1, :]
         + rel[:, 1:2] * wsmall_ref[1:2, :]
         + rel[:, 2:3] * wsmall_ref[2:3, :]
         + wsmall_ref[3:4, :])                                # + bd1
    h = jnp.maximum(h, 0.0)
    pos = (jnp.dot(h, wsq_ref[0:d_model, :],
                   preferred_element_type=jnp.float32)
           + wsmall_ref[4:5, :])                              # [T*K, dm]

    # ---- fc_gamma(q[:,None] - k + pos), flat [T*K, dm] layout ---------------
    qb = jnp.broadcast_to(q[:, None, :], (T, K, d_model)).reshape(T * K, d_model)
    g = jnp.maximum(
        jnp.dot(qb - kg + pos, wsq_ref[d_model:2 * d_model, :],
                preferred_element_type=jnp.float32) + wsmall_ref[5:6, :], 0.0)
    g = (jnp.dot(g, wsq_ref[2 * d_model:3 * d_model, :],
                 preferred_element_type=jnp.float32) + wsmall_ref[6:7, :])

    # ---- softmax over K (axis=-2 of [T, K, dm]); exact reciprocal -----------
    g3 = g.reshape(T, K, d_model) * (1.0 / math.sqrt(d_model))
    g3 = g3 - jnp.max(g3, axis=1, keepdims=True)
    e = jnp.exp(g3)
    attn = e / jnp.sum(e, axis=1, keepdims=True)
    attn_ref[...] = attn

    # ---- res = sum_K attn * (v + pos); fc2; residual -------------------------
    res = jnp.sum(attn * (vg + pos).reshape(T, K, d_model), axis=1)   # [T, dm]
    res_ref[...] = (jnp.dot(res, w2_ref[...],
                            preferred_element_type=jnp.float32)
                    + b2_ref[...] + feat_tile)


# -----------------------------------------------------------------------------
# Generation-aware VMEM budget and tile selection.
# -----------------------------------------------------------------------------
def _vmem_limit_bytes():
    cap = 128 * 1024 * 1024
    try:
        info = pltpu.get_tpu_info()
        cap = int(getattr(info, "vmem_capacity_bytes", cap) or cap)
    except Exception:
        pass
    # ~48 MiB on v7x (64 MiB/TC), 80 MiB on 128 MiB parts — leaves headroom
    # for compiler-internal scratch, spills and double-buffered streams.
    return min((cap * 3) // 4, 80 * 1024 * 1024)


def _pick_gather_chunk(N, cap=512):
    if N <= cap:
        return N
    for c in range(cap, 7, -1):
        if N % c == 0 and c % 8 == 0:
            return c
    return N


def _pick_tile_n(N, K, d_model, d_points, n_chunk, budget_bytes):
    weights = (d_points * 3 * d_model + 3 * d_model          # wqkv, bqkv
               + 3 * d_model * d_model + 8 * d_model         # wsq, wsmall
               + d_model * d_points + d_points)              # w2, b2
    fixed = 4 * (2 * N * d_points                            # feat (dbl-buffered)
                 + 2 * weights                               # weights (dbl-buffered)
                 + N * 3 * d_model)                          # kv VMEM scratch
    for t in range(min(N, 1024), 0, -1):
        if N % t:
            continue
        if t != N and t % 8:
            continue
        streamed = 2 * 4 * (t * K + 3 * t * K                # idx, rel
                            + t * d_points                   # res out
                            + t * K * d_model)               # attn out
        temps = 4 * (t * K * n_chunk                         # one-hot chunk
                     + 8 * t * K * d_model                   # kvg/pos/qb/g/e/attn
                     + 4 * t * d_model)                      # q / tile slices
        total = fixed + streamed + temps
        if total + total // 4 <= budget_bytes:                # ~25% headroom
            return t
    return 8 if N % 8 == 0 else N


# -----------------------------------------------------------------------------
# JAX glue + wrapper
# -----------------------------------------------------------------------------
def jax_index_points(points, idx):
    # points: [B, N, C], idx: [B, S, K] -> [B, S, K, C]
    b = jnp.arange(points.shape[0])[:, None, None]
    return points[b, idx]


def _knn_indices(xyz, K, chunk=256):
    """Exact squared distances, computed per query chunk so the full [B, N, N]
    matrix is never materialized at once.  Exact form avoids the cancellation
    of the sq_i + sq_j - 2*x.y formulation."""
    # TODO(synk): the top-k neighbor selection itself (lax.top_k) has no clean
    # Pallas equivalent; kept in plain JAX.
    B, N, _ = xyz.shape
    c = min(chunk, N)
    parts = []
    for c0 in range(0, N, c):
        d = jnp.sum((xyz[:, c0:c0 + c, None, :] - xyz[:, None, :, :]) ** 2,
                    axis=-1)                                   # [B, c, N]
        parts.append(jax.lax.top_k(-d, K)[1].astype(jnp.int32))
    return jnp.concatenate(parts, axis=1)                     # [B, N, K]


def transformer_block_forward(xyz, features, params, K):
    B, N, _ = xyz.shape
    d_points = features.shape[-1]
    d_model = params["w1"].shape[1]

    # ---- fold fc1 into the q/k/v projections (exact up to fp association) ---
    wqkv = jnp.concatenate([params["w1"] @ params["wq"],
                            params["w1"] @ params["wk"],
                            params["w1"] @ params["wv"]], axis=1)   # [dp, 3dm]
    bqkv = jnp.concatenate([params["b1"] @ params["wq"],
                            params["b1"] @ params["wk"],
                            params["b1"] @ params["wv"]], axis=1)   # [1, 3dm]
    # ---- pack the remaining weights into few streams -------------------------
    wsq = jnp.concatenate([params["wd2"], params["wg1"], params["wg2"]],
                          axis=0)                                    # [3dm, dm]
    wsmall = jnp.concatenate([params["wd1"], params["bd1"], params["bd2"],
                              params["bg1"], params["bg2"],
                              jnp.zeros((1, d_model), jnp.float32)],
                             axis=0)                                 # [8, dm]

    vmem_limit = _vmem_limit_bytes()
    n_chunk = _pick_gather_chunk(N)
    TN = _pick_tile_n(N, K, d_model, d_points, n_chunk, (vmem_limit * 4) // 5)
    n_tiles = N // TN

    # ---- kNN glue ------------------------------------------------------------
    knn_idx = _knn_indices(xyz, K)                                   # [B, N, K]
    knn_xyz = jax_index_points(xyz, knn_idx)                         # [B, N, K, 3]
    rel = (xyz[:, :, None, :] - knn_xyz).reshape(B, N * K, 3)

    wmap = lambda b, n: (0, 0)   # weights: constant block index -> fetched once
    kernel = functools.partial(attn_kernel, n_chunk=n_chunk)

    res, attn = pl.pallas_call(
        kernel,
        out_shape=(jax.ShapeDtypeStruct((B, N, d_points), jnp.float32),
                   jax.ShapeDtypeStruct((B, N, K, d_model), jnp.float32)),
        grid=(B, n_tiles),
        in_specs=[
            pl.BlockSpec((None, N, d_points), lambda b, n: (b, 0, 0)),   # feat (per-batch)
            pl.BlockSpec((None, TN, K), lambda b, n: (b, n, 0)),         # knn_idx
            pl.BlockSpec((None, TN * K, 3), lambda b, n: (b, n, 0)),     # rel
            pl.BlockSpec((d_points, 3 * d_model), wmap),                 # wqkv
            pl.BlockSpec((1, 3 * d_model), wmap),                        # bqkv
            pl.BlockSpec((3 * d_model, d_model), wmap),                  # wd2|wg1|wg2
            pl.BlockSpec((8, d_model), wmap),                            # wd1|biases
            pl.BlockSpec((d_model, d_points), wmap),                     # w2
            pl.BlockSpec((1, d_points), wmap),                           # b2
        ],
        out_specs=(
            pl.BlockSpec((None, TN, d_points), lambda b, n: (b, n, 0)),
            pl.BlockSpec((None, TN, K, d_model), lambda b, n: (b, n, 0, 0)),
        ),
        scratch_shapes=[pltpu.VMEM((N, 3 * d_model), jnp.float32)],
        compiler_params=pltpu.CompilerParams(
            dimension_semantics=("parallel", "arbitrary"),
            vmem_limit_bytes=vmem_limit),
    )(features, knn_idx, rel, wqkv, bqkv, wsq, wsmall,
      params["w2"], params["b2"])

    return res, attn


# -----------------------------------------------------------------------------
# Pure-JAX reference (faithful to the PyTorch module) for correctness check.
# -----------------------------------------------------------------------------
def reference_forward(xyz, features, params, K):
    d_model = params["w1"].shape[1]
    dists = jnp.sum((xyz[:, :, None, :] - xyz[:, None, :, :]) ** 2, axis=-1)
    knn_idx = jnp.argsort(dists, axis=-1)[:, :, :K]
    knn_xyz = jax_index_points(xyz, knn_idx)
    x = features @ params["w1"] + params["b1"]
    q = x @ params["wq"]
    kk = jax_index_points(x @ params["wk"], knn_idx)
    vv = jax_index_points(x @ params["wv"], knn_idx)
    rel = xyz[:, :, None, :] - knn_xyz
    pos = (jnp.maximum(rel @ params["wd1"] + params["bd1"], 0.0)
           @ params["wd2"] + params["bd2"])
    g = q[:, :, None, :] - kk + pos
    g = (jnp.maximum(g @ params["wg1"] + params["bg1"], 0.0)
         @ params["wg2"] + params["bg2"])
    attn = jax.nn.softmax(g / math.sqrt(d_model), axis=-2)
    res = jnp.sum(attn * (vv + pos), axis=2)
    res = res @ params["w2"] + params["b2"] + features
    return res, attn


# -----------------------------------------------------------------------------
# Deterministic parameter init (matches nn.Linear shapes).
# -----------------------------------------------------------------------------
def init_params(key, d_points, d_model):
    ks = jax.random.split(key, 12)
    f = lambda k, shape: (jax.random.normal(k, shape, jnp.float32) * 0.1)
    return {
        "w1":  f(ks[0], (d_points, d_model)),  "b1":  f(ks[1], (1, d_model)),
        "wq":  f(ks[2], (d_model, d_model)),
        "wk":  f(ks[3], (d_model, d_model)),
        "wv":  f(ks[4], (d_model, d_model)),
        "wd1": f(ks[5], (3, d_model)),         "bd1": f(ks[6], (1, d_model)),
        "wd2": f(ks[7], (d_model, d_model)),   "bd2": f(ks[8], (1, d_model)),
        "wg1": f(ks[9], (d_model, d_model)),   "bg1": jnp.zeros((1, d_model), jnp.float32),
        "wg2": f(ks[10], (d_model, d_model)),  "bg2": jnp.zeros((1, d_model), jnp.float32),
        "w2":  f(ks[11], (d_model, d_points)), "b2":  jnp.zeros((1, d_points), jnp.float32),
    }


if __name__ == "__main__":
    B, N, d_points, d_model, K = 2, 16, 16, 32, 8

    key = jax.random.PRNGKey(0)
    k_xyz, k_feat, k_par = jax.random.split(key, 3)
    xyz = jax.random.normal(k_xyz, (B, N, 3), jnp.float32)
    features = jax.random.normal(k_feat, (B, N, d_points), jnp.float32)
    params = init_params(k_par, d_points, d_model)

    fwd = jax.jit(functools.partial(transformer_block_forward, K=K))
    res, attn = fwd(xyz, features, params)
    jax.block_until_ready((res, attn))

    res_ref, attn_ref = reference_forward(xyz, features, params, K)
    assert res.shape == (B, N, d_points) and attn.shape == (B, N, K, d_model)
    assert jnp.allclose(res, res_ref, rtol=1e-2, atol=1e-2)
    assert jnp.allclose(attn, attn_ref, rtol=1e-2, atol=1e-2)

    print("KERNEL_OK")
</pallas_src>

<mosaic_0001>
module attributes {stable_mosaic.version = 11 : i64} {
  func.func @attn_kernel(%arg0: i32, %arg1: i32, %arg2: memref<1x16x16xf32, #tpu.memory_space<vmem>>, %arg3: memref<1x16x8xi32, #tpu.memory_space<vmem>>, %arg4: memref<1x128x3xf32, #tpu.memory_space<vmem>>, %arg5: memref<16x96xf32, #tpu.memory_space<vmem>>, %arg6: memref<1x96xf32, #tpu.memory_space<vmem>>, %arg7: memref<96x32xf32, #tpu.memory_space<vmem>>, %arg8: memref<8x32xf32, #tpu.memory_space<vmem>>, %arg9: memref<32x16xf32, #tpu.memory_space<vmem>>, %arg10: memref<1x16xf32, #tpu.memory_space<vmem>>, %arg11: memref<1x16x16xf32, #tpu.memory_space<vmem>>, %arg12: memref<1x16x8x32xf32, #tpu.memory_space<vmem>>, %arg13: memref<16x96xf32, #tpu.memory_space<vmem>>) attributes {dimension_semantics = [#tpu.dimension_semantics<parallel>, #tpu.dimension_semantics<arbitrary>], iteration_bounds = array<i64: 2, 1>, scalar_prefetch = 0 : i64, scratch_operands = 1 : i64, tpu.core_type = #tpu.core_type<tc>, window_params = [{transform_indices = @transform_0, window_bounds = array<i64: 1, 16, 16>}, {transform_indices = @transform_1, window_bounds = array<i64: 1, 16, 8>}, {transform_indices = @transform_2, window_bounds = array<i64: 1, 128, 3>}, {pipeline_mode = #tpu.pipeline_mode<synchronous>, transform_indices = @transform_3, window_bounds = array<i64: 16, 96>}, {pipeline_mode = #tpu.pipeline_mode<synchronous>, transform_indices = @transform_4, window_bounds = array<i64: 1, 96>}, {pipeline_mode = #tpu.pipeline_mode<synchronous>, transform_indices = @transform_5, window_bounds = array<i64: 96, 32>}, {pipeline_mode = #tpu.pipeline_mode<synchronous>, transform_indices = @transform_6, window_bounds = array<i64: 8, 32>}, {pipeline_mode = #tpu.pipeline_mode<synchronous>, transform_indices = @transform_7, window_bounds = array<i64: 32, 16>}, {pipeline_mode = #tpu.pipeline_mode<synchronous>, transform_indices = @transform_8, window_bounds = array<i64: 1, 16>}, {transform_indices = @transform_9, window_bounds = array<i64: 1, 16, 16>}, {transform_indices = @transform_10, window_bounds = array<i64: 1, 16, 8, 32>}]} {
    %c0_i32 = arith.constant 0 : i32
    %0 = arith.cmpi eq, %arg1, %c0_i32 : i32
    %1 = arith.extui %0 : i1 to i32
    %c0_i32_0 = arith.constant 0 : i32
    %2 = arith.cmpi ne, %1, %c0_i32_0 : i32
    scf.if %2 {
      %c0_45 = arith.constant 0 : index
      %c0_46 = arith.constant 0 : index
      %c0_47 = arith.constant 0 : index
      %102 = vector.load %arg2[%c0_45, %c0_46, %c0_47] : memref<1x16x16xf32, #tpu.memory_space<vmem>>, vector<1x16x16xf32>
      %103 = vector.shape_cast %102 : vector<1x16x16xf32> to vector<16x16xf32>
      %c0_48 = arith.constant 0 : index
      %c0_49 = arith.constant 0 : index
      %104 = vector.load %arg5[%c0_48, %c0_49] : memref<16x96xf32, #tpu.memory_space<vmem>>, vector<16x96xf32>
      %cst_50 = arith.constant dense<0.000000e+00> : vector<16x96xf32>
      %105 = tpu.matmul %103, %104, %cst_50 {dimension_numbers = #tpu.dot_dimension_numbers<[1], [0], [0], [1], [0, 0, 1, 1], [], []>} : vector<16x16xf32>, vector<16x96xf32>, vector<16x96xf32> -> vector<16x96xf32>
      %c0_51 = arith.constant 0 : index
      %c0_52 = arith.constant 0 : index
      %106 = vector.load %arg6[%c0_51, %c0_52] : memref<1x96xf32, #tpu.memory_space<vmem>>, vector<1x96xf32>
      %107 = vector.broadcast %106 : vector<1x96xf32> to vector<16x96xf32>
      %108 = arith.addf %105, %107 : vector<16x96xf32>
      %c0_53 = arith.constant 0 : index
      %c0_54 = arith.constant 0 : index
      %109 = vector.load %arg13[%c0_53, %c0_54] : memref<16x96xf32, #tpu.memory_space<vmem>>, vector<16x96xf32>
      tpu.vector_store %arg13[%c0_53, %c0_54], %108 {strides = array<i32>} : memref<16x96xf32, #tpu.memory_space<vmem>>, vector<16x96xf32>,
    } else {
    }
    %c16_i32 = arith.constant 16 : i32
    %3 = arith.muli %arg1, %c16_i32 : i32
    %4 = tpu.assume_multiple %3, 8 : i32
    %c0 = arith.constant 0 : index
    %5 = arith.index_cast %4 : i32 to index
    %c0_1 = arith.constant 0 : index
    %6 = vector.load %arg2[%c0, %5, %c0_1] : memref<1x16x16xf32, #tpu.memory_space<vmem>>, vector<1x16x16xf32>
    %7 = vector.shape_cast %6 : vector<1x16x16xf32> to vector<16x16xf32>
    %8 = arith.index_cast %4 : i32 to index
    %c0_2 = arith.constant 0 : index
    %9 = vector.load %arg13[%8, %c0_2] : memref<16x96xf32, #tpu.memory_space<vmem>>, vector<16x96xf32>
    %10 = vector.extract_strided_slice %9 {offsets = [0, 0], sizes = [16, 32], strides = [1, 1]} : vector<16x96xf32> to vector<16x32xf32>
    %c0_3 = arith.constant 0 : index
    %c0_4 = arith.constant 0 : index
    %c0_5 = arith.constant 0 : index
    %11 = vector.load %arg3[%c0_3, %c0_4, %c0_5] : memref<1x16x8xi32, #tpu.memory_space<vmem>>, vector<1x16x8xi32>
    %12 = vector.shape_cast %11 : vector<1x16x8xi32> to vector<16x8xi32>
    %13 = vector.shape_cast %12 : vector<16x8xi32> to vector<16x8x1xi32>
    %14 = tpu.iota {dimensions = array<i32: 2>} : vector<16x8x16xi32>
    %c0_i32_6 = arith.constant 0 : i32
    %15 = vector.broadcast %c0_i32_6 : i32 to vector<16x8x16xi32>
    %16 = arith.addi %15, %14 : vector<16x8x16xi32>
    %17 = vector.broadcast %13 : vector<16x8x1xi32> to vector<16x8x16xi32>
    %18 = arith.cmpi eq, %17, %16 : vector<16x8x16xi32>
    %19 = arith.extui %18 : vector<16x8x16xi1> to vector<16x8x16xi32>
    %20 = arith.sitofp %19 : vector<16x8x16xi32> to vector<16x8x16xf32>
    %21 = vector.shape_cast %20 : vector<16x8x16xf32> to vector<128x16xf32>
    %c0_7 = arith.constant 0 : index
    %c0_8 = arith.constant 0 : index
    %22 = vector.load %arg13[%c0_7, %c0_8] : memref<16x96xf32, #tpu.memory_space<vmem>>, vector<16x96xf32>
    %23 = vector.extract_strided_slice %22 {offsets = [0, 32], sizes = [16, 64], strides = [1, 1]} : vector<16x96xf32> to vector<16x64xf32>
    %cst = arith.constant dense<0.000000e+00> : vector<128x64xf32>
    %24 = tpu.matmul %21, %23, %cst {dimension_numbers = #tpu.dot_dimension_numbers<[1], [0], [0], [1], [0, 0, 1, 1], [], []>} : vector<128x16xf32>, vector<16x64xf32>, vector<128x64xf32> -> vector<128x64xf32>
    %25 = vector.extract_strided_slice %24 {offsets = [0, 0], sizes = [128, 32], strides = [1, 1]} : vector<128x64xf32> to vector<128x32xf32>
    %26 = vector.extract_strided_slice %24 {offsets = [0, 32], sizes = [128, 32], strides = [1, 1]} : vector<128x64xf32> to vector<128x32xf32>
    %c0_9 = arith.constant 0 : index
    %c0_10 = arith.constant 0 : index
    %c0_11 = arith.constant 0 : index
    %27 = vector.load %arg4[%c0_9, %c0_10, %c0_11] : memref<1x128x3xf32, #tpu.memory_space<vmem>>, vector<1x128x3xf32>
    %28 = vector.shape_cast %27 : vector<1x128x3xf32> to vector<128x3xf32>
    %29 = vector.extract_strided_slice %28 {offsets = [0, 0], sizes = [128, 1], strides = [1, 1]} : vector<128x3xf32> to vector<128x1xf32>
    %c0_12 = arith.constant 0 : index
    %c0_13 = arith.constant 0 : index
    %30 = vector.load %arg8[%c0_12, %c0_13] : memref<8x32xf32, #tpu.memory_space<vmem>>, vector<1x32xf32>
    %31 = vector.broadcast %29 : vector<128x1xf32> to vector<128x32xf32>
    %32 = vector.broadcast %30 : vector<1x32xf32> to vector<128x32xf32>
    %33 = arith.mulf %31, %32 : vector<128x32xf32>
    %34 = vector.extract_strided_slice %28 {offsets = [0, 1], sizes = [128, 1], strides = [1, 1]} : vector<128x3xf32> to vector<128x1xf32>
    %c1 = arith.constant 1 : index
    %c0_14 = arith.constant 0 : index
    %35 = vector.load %arg8[%c1, %c0_14] : memref<8x32xf32, #tpu.memory_space<vmem>>, vector<1x32xf32>
    %36 = vector.broadcast %34 : vector<128x1xf32> to vector<128x32xf32>
    %37 = vector.broadcast %35 : vector<1x32xf32> to vector<128x32xf32>
    %38 = arith.mulf %36, %37 : vector<128x32xf32>
    %39 = arith.addf %33, %38 : vector<128x32xf32>
    %40 = vector.extract_strided_slice %28 {offsets = [0, 2], sizes = [128, 1], strides = [1, 1]} : vector<128x3xf32> to vector<128x1xf32>
    %c2 = arith.constant 2 : index
    %c0_15 = arith.constant 0 : index
    %41 = vector.load %arg8[%c2, %c0_15] : memref<8x32xf32, #tpu.memory_space<vmem>>, vector<1x32xf32>
    %42 = vector.broadcast %40 : vector<128x1xf32> to vector<128x32xf32>
    %43 = vector.broadcast %41 : vector<1x32xf32> to vector<128x32xf32>
    %44 = arith.mulf %42, %43 : vector<128x32xf32>
    %45 = arith.addf %39, %44 : vector<128x32xf32>
    %c3 = arith.constant 3 : index
    %c0_16 = arith.constant 0 : index
    %46 = vector.load %arg8[%c3, %c0_16] : memref<8x32xf32, #tpu.memory_space<vmem>>, vector<1x32xf32>
    %47 = vector.broadcast %46 : vector<1x32xf32> to vector<128x32xf32>
    %48 = arith.addf %45, %47 : vector<128x32xf32>
    %cst_17 = arith.constant 0.000000e+00 : f32
    %49 = vector.broadcast %cst_17 : f32 to vector<128x32xf32>
    %50 = arith.maximumf %48, %49 : vector<128x32xf32>
    %c0_18 = arith.constant 0 : index
    %c0_19 = arith.constant 0 : index
    %51 = vector.load %arg7[%c0_18, %c0_19] : memref<96x32xf32, #tpu.memory_space<vmem>>, vector<32x32xf32>
    %cst_20 = arith.constant dense<0.000000e+00> : vector<128x32xf32>
    %52 = tpu.matmul %50, %51, %cst_20 {dimension_numbers = #tpu.dot_dimension_numbers<[1], [0], [0], [1], [0, 0, 1, 1], [], []>} : vector<128x32xf32>, vector<32x32xf32>, vector<128x32xf32> -> vector<128x32xf32>
    %c4 = arith.constant 4 : index
    %c0_21 = arith.constant 0 : index
    %53 = vector.load %arg8[%c4, %c0_21] : memref<8x32xf32, #tpu.memory_space<vmem>>, vector<1x32xf32>
    %54 = vector.broadcast %53 : vector<1x32xf32> to vector<128x32xf32>
    %55 = arith.addf %52, %54 : vector<128x32xf32>
    %56 = vector.shape_cast %10 : vector<16x32xf32> to vector<16x1x32xf32>
    %57 = vector.shape_cast %56 : vector<16x1x32xf32> to vector<16x1x32xf32>
    %58 = vector.broadcast %57 : vector<16x1x32xf32> to vector<16x8x32xf32>
    %59 = vector.shape_cast %58 : vector<16x8x32xf32> to vector<128x32xf32>
    %60 = arith.subf %59, %25 : vector<128x32xf32>
    %61 = arith.addf %60, %55 : vector<128x32xf32>
    %c32 = arith.constant 32 : index
    %c0_22 = arith.constant 0 : index
    %62 = vector.load %arg7[%c32, %c0_22] : memref<96x32xf32, #tpu.memory_space<vmem>>, vector<32x32xf32>
    %cst_23 = arith.constant dense<0.000000e+00> : vector<128x32xf32>
    %63 = tpu.matmul %61, %62, %cst_23 {dimension_numbers = #tpu.dot_dimension_numbers<[1], [0], [0], [1], [0, 0, 1, 1], [], []>} : vector<128x32xf32>, vector<32x32xf32>, vector<128x32xf32> -> vector<128x32xf32>
    %c5 = arith.constant 5 : index
    %c0_24 = arith.constant 0 : index
    %64 = vector.load %arg8[%c5, %c0_24] : memref<8x32xf32, #tpu.memory_space<vmem>>, vector<1x32xf32>
    %65 = vector.broadcast %64 : vector<1x32xf32> to vector<128x32xf32>
    %66 = arith.addf %63, %65 : vector<128x32xf32>
    %cst_25 = arith.constant 0.000000e+00 : f32
    %67 = vector.broadcast %cst_25 : f32 to vector<128x32xf32>
    %68 = arith.maximumf %66, %67 : vector<128x32xf32>
    %c64 = arith.constant 64 : index
    %c0_26 = arith.constant 0 : index
    %69 = vector.load %arg7[%c64, %c0_26] : memref<96x32xf32, #tpu.memory_space<vmem>>, vector<32x32xf32>
    %cst_27 = arith.constant dense<0.000000e+00> : vector<128x32xf32>
    %70 = tpu.matmul %68, %69, %cst_27 {dimension_numbers = #tpu.dot_dimension_numbers<[1], [0], [0], [1], [0, 0, 1, 1], [], []>} : vector<128x32xf32>, vector<32x32xf32>, vector<128x32xf32> -> vector<128x32xf32>
    %c6 = arith.constant 6 : index
    %c0_28 = arith.constant 0 : index
    %71 = vector.load %arg8[%c6, %c0_28] : memref<8x32xf32, #tpu.memory_space<vmem>>, vector<1x32xf32>
    %72 = vector.broadcast %71 : vector<1x32xf32> to vector<128x32xf32>
    %73 = arith.addf %70, %72 : vector<128x32xf32>
    %74 = vector.shape_cast %73 : vector<128x32xf32> to vector<16x8x32xf32>
    %cst_29 = arith.constant 0.176776692 : f32
    %75 = vector.broadcast %cst_29 : f32 to vector<16x8x32xf32>
    %76 = arith.mulf %74, %75 : vector<16x8x32xf32>
    %cst_30 = arith.constant dense<0xFF800000> : vector<16x32xf32>
    %77 = vector.multi_reduction <maximumf>, %76, %cst_30 [1] : vector<16x8x32xf32> to vector<16x32xf32>
    %78 = vector.shape_cast %77 : vector<16x32xf32> to vector<16x1x32xf32>
    %79 = vector.broadcast %78 : vector<16x1x32xf32> to vector<16x8x32xf32>
    %80 = arith.subf %76, %79 : vector<16x8x32xf32>
    %81 = math.exp %80 : vector<16x8x32xf32>
    %cst_31 = arith.constant dense<0.000000e+00> : vector<16x32xf32>
    %82 = vector.multi_reduction <add>, %81, %cst_31 [1] : vector<16x8x32xf32> to vector<16x32xf32>
    %83 = vector.shape_cast %82 : vector<16x32xf32> to vector<16x1x32xf32>
    %84 = vector.broadcast %83 : vector<16x1x32xf32> to vector<16x8x32xf32>
    %85 = arith.divf %81, %84 : vector<16x8x32xf32>
    %c0_32 = arith.constant 0 : index
    %c0_33 = arith.constant 0 : index
    %c0_34 = arith.constant 0 : index
    %c0_35 = arith.constant 0 : index
    %86 = vector.load %arg12[%c0_32, %c0_33, %c0_34, %c0_35] : memref<1x16x8x32xf32, #tpu.memory_space<vmem>>, vector<1x16x8x32xf32>
    %87 = vector.shape_cast %86 : vector<1x16x8x32xf32> to vector<16x8x32xf32>
    %88 = vector.shape_cast %85 : vector<16x8x32xf32> to vector<1x16x8x32xf32>
    tpu.vector_store %arg12[%c0_32, %c0_33, %c0_34, %c0_35], %88 {strides = array<i32>} : memref<1x16x8x32xf32, #tpu.memory_space<vmem>>, vector<1x16x8x32xf32>,
    %89 = arith.addf %26, %55 : vector<128x32xf32>
    %90 = vector.shape_cast %89 : vector<128x32xf32> to vector<16x8x32xf32>
    %91 = arith.mulf %85, %90 : vector<16x8x32xf32>
    %cst_36 = arith.constant dense<0.000000e+00> : vector<16x32xf32>
    %92 = vector.multi_reduction <add>, %91, %cst_36 [1] : vector<16x8x32xf32> to vector<16x32xf32>
    %c0_37 = arith.constant 0 : index
    %c0_38 = arith.constant 0 : index
    %93 = vector.load %arg9[%c0_37, %c0_38] : memref<32x16xf32, #tpu.memory_space<vmem>>, vector<32x16xf32>
    %cst_39 = arith.constant dense<0.000000e+00> : vector<16x16xf32>
    %94 = tpu.matmul %92, %93, %cst_39 {dimension_numbers = #tpu.dot_dimension_numbers<[1], [0], [0], [1], [0, 0, 1, 1], [], []>} : vector<16x32xf32>, vector<32x16xf32>, vector<16x16xf32> -> vector<16x16xf32>
    %c0_40 = arith.constant 0 : index
    %c0_41 = arith.constant 0 : index
    %95 = vector.load %arg10[%c0_40, %c0_41] : memref<1x16xf32, #tpu.memory_space<vmem>>, vector<1x16xf32>
    %96 = vector.broadcast %95 : vector<1x16xf32> to vector<16x16xf32>
    %97 = arith.addf %94, %96 : vector<16x16xf32>
    %98 = arith.addf %97, %7 : vector<16x16xf32>
    %c0_42 = arith.constant 0 : index
    %c0_43 = arith.constant 0 : index
    %c0_44 = arith.constant 0 : index
    %99 = vector.load %arg11[%c0_42, %c0_43, %c0_44] : memref<1x16x16xf32, #tpu.memory_space<vmem>>, vector<1x16x16xf32>
    %100 = vector.shape_cast %99 : vector<1x16x16xf32> to vector<16x16xf32>
    %101 = vector.shape_cast %98 : vector<16x16xf32> to vector<1x16x16xf32>
    tpu.vector_store %arg11[%c0_42, %c0_43, %c0_44], %101 {strides = array<i32>} : memref<1x16x16xf32, #tpu.memory_space<vmem>>, vector<1x16x16xf32>,
    return
  }
  func.func @transform_0(%arg0: i32, %arg1: i32) -> (i32, i32, i32) {
    %c0_i32 = arith.constant 0 : i32
    %c0_i32_0 = arith.constant 0 : i32
    %c0_i32_1 = arith.constant 0 : i32
    return %arg0, %c0_i32, %c0_i32_0 : i32, i32, i32
  }
  func.func @transform_1(%arg0: i32, %arg1: i32) -> (i32, i32, i32) {
    %c0_i32 = arith.constant 0 : i32
    %c0_i32_0 = arith.constant 0 : i32
    return %arg0, %arg1, %c0_i32 : i32, i32, i32
  }
  func.func @transform_2(%arg0: i32, %arg1: i32) -> (i32, i32, i32) {
    %c0_i32 = arith.constant 0 : i32
    %c0_i32_0 = arith.constant 0 : i32
    return %arg0, %arg1, %c0_i32 : i32, i32, i32
  }
  func.func @transform_3(%arg0: i32, %arg1: i32) -> (i32, i32) {
    %c0_i32 = arith.constant 0 : i32
    %c0_i32_0 = arith.constant 0 : i32
    %c0_i32_1 = arith.constant 0 : i32
    return %c0_i32, %c0_i32_0 : i32, i32
  }
  func.func @transform_4(%arg0: i32, %arg1: i32) -> (i32, i32) {
    %c0_i32 = arith.constant 0 : i32
    %c0_i32_0 = arith.constant 0 : i32
    %c0_i32_1 = arith.constant 0 : i32
    return %c0_i32, %c0_i32_0 : i32, i32
  }
  func.func @transform_5(%arg0: i32, %arg1: i32) -> (i32, i32) {
    %c0_i32 = arith.constant 0 : i32
    %c0_i32_0 = arith.constant 0 : i32
    %c0_i32_1 = arith.constant 0 : i32
    return %c0_i32, %c0_i32_0 : i32, i32
  }
  func.func @transform_6(%arg0: i32, %arg1: i32) -> (i32, i32) {
    %c0_i32 = arith.constant 0 : i32
    %c0_i32_0 = arith.constant 0 : i32
    %c0_i32_1 = arith.constant 0 : i32
    return %c0_i32, %c0_i32_0 : i32, i32
  }
  func.func @transform_7(%arg0: i32, %arg1: i32) -> (i32, i32) {
    %c0_i32 = arith.constant 0 : i32
    %c0_i32_0 = arith.constant 0 : i32
    %c0_i32_1 = arith.constant 0 : i32
    return %c0_i32, %c0_i32_0 : i32, i32
  }
  func.func @transform_8(%arg0: i32, %arg1: i32) -> (i32, i32) {
    %c0_i32 = arith.constant 0 : i32
    %c0_i32_0 = arith.constant 0 : i32
    %c0_i32_1 = arith.constant 0 : i32
    return %c0_i32, %c0_i32_0 : i32, i32
  }
  func.func @transform_9(%arg0: i32, %arg1: i32) -> (i32, i32, i32) {
    %c0_i32 = arith.constant 0 : i32
    %c0_i32_0 = arith.constant 0 : i32
    return %arg0, %arg1, %c0_i32 : i32, i32, i32
  }
  func.func @transform_10(%arg0: i32, %arg1: i32) -> (i32, i32, i32, i32) {
    %c0_i32 = arith.constant 0 : i32
    %c0_i32_0 = arith.constant 0 : i32
    %c0_i32_1 = arith.constant 0 : i32
    return %arg0, %arg1, %c0_i32, %c0_i32_0 : i32, i32, i32, i32
  }
}

</mosaic_0001>

<bundles_post_ra>
// kernel: neg.1
= control target key start
LH: loop header
LB: loop body
LE: loop exit
PB: predicated region body
PF: predicated region fallthrough
CT: control target
= control target key end

     0   :  { %s72_s0 = inlined_call_operand.vmem [shape: f32[2,16,16], index: 0, kind: input, shape index: {}]   ;;  %s73_s1 = inlined_call_operand.vmem [shape: f32[2,16,16], index: 1, kind: output, shape index: {}]  }
   0x1   :  { %v2_v0 = vld [vmem:[%s72_s0] sm:$0xff]  ;;  %v32_v1 = vld [vmem:[%s72_s0 + $0x10] sm:$0xff]  ;;  %v34_v2 = vld [vmem:[%s72_s0 + $0x8] sm:$0xff] }
   0x2   :  { %v5_v3 = vxor.u32 2147483648, %v2_v0  ;;  %v12_v4 = vxor.u32 2147483648, %v32_v1  ;;  %v20_v5 = vxor.u32 2147483648, %v34_v2  ;;  %v36_v6 = vld [vmem:[%s72_s0 + $0x18] sm:$0xff] }
   0x3   :  { %v28_v7 = vxor.u32 2147483648, %v36_v6 }
   0x4   :  { %7 = vst [vmem:[%s73_s1] sm:$0xff] %v5_v3 }
   0x5   :  { %33 = vst [vmem:[%s73_s1 + $0x10] sm:$0xff] %v12_v4 }
   0x6   :  { %35 = vst [vmem:[%s73_s1 + $0x8] sm:$0xff] %v20_v5 }
   0x7   :  { %37 = vst [vmem:[%s73_s1 + $0x18] sm:$0xff] %v28_v7 }

// kernel: transformer_block_forward.1
= control target key start
LH: loop header
LB: loop body
LE: loop exit
PB: predicated region body
PF: predicated region fallthrough
CT: control target
= control target key end

     0   :  { %s4333_s0 = inlined_call_operand.vmem [shape: f32[2,16,16], index: 0, kind: input, shape index: {}]   ;;  %s4334_s1 = inlined_call_operand.vmem [shape: s32[2,16,8], index: 1, kind: input, shape index: {}]   ;;  %s4335_s2 = inlined_call_operand.vmem [shape: f32[2,128,3], index: 2, kind: input, shape index: {}]   ;;  %s4336_s3 = inlined_call_operand.vmem [shape: f32[16,96], index: 3, kind: input, shape index: {}]   ;;  %s4337_s4 = inlined_call_operand.vmem [shape: f32[1,96], index: 4, kind: input, shape index: {}]   ;;  %s4338_s5 = inlined_call_operand.vmem [shape: f32[96,32], index: 5, kind: input, shape index: {}]   ;;  %s4339_s6 = inlined_call_operand.vmem [shape: f32[8,32], index: 6, kind: input, shape index: {}]   ;;  %s4340_s7 = inlined_call_operand.vmem [shape: f32[32,16], index: 7, kind: input, shape index: {}]   ;;  %s4341_s8 = inlined_call_operand.vmem [shape: f32[1,16], index: 8, kind: input, shape index: {}]   ;;  %s4342_s9 = inlined_call_operand.hbm [shape: f32[2,16,16], index: 9, kind: output, shape index: {0}]   ;;  %s4343_s10 = inlined_call_operand.hbm [shape: f32[2,16,8,32], index: 10, kind: output, shape index: {1}]  }
   0x1   :  { %4344 = sst [smem:[#allocation9_spill]] %s4333_s0 }
   0x2   :  { %4345 = sst [smem:[#allocation10_spill]] %s4334_s1 }
   0x3   :  { %4346 = sst [smem:[#allocation11_spill]] %s4335_s2 }
   0x4   :  { %4347 = sst [smem:[#allocation12_spill]] %s4336_s3 }
   0x5   :  { %4348 = sst [smem:[#allocation13_spill]] %s4337_s4 }
   0x6   :  { %4349 = sst [smem:[#allocation14_spill]] %s4338_s5 }
   0x7   :  { %16 = vsyncpa [#allocation4], 0 }
   0x8   :  { %18 = vsyncpa [#allocation4 + $0x1], 0 }
   0x9   :  { %19 = vsyncpa [#allocation6], 0 }
   0xa   :  { %21 = vsyncpa [#allocation6 + $0x1], 0  ;;  %s3177_s13 = smov 0   ;;  %s3179_s14 = smov 0  }
   0xb   :  { %s3181_s15 = smov 0   ;;  %s3183_s16 = smov 0  }
   0xc   :  { %s3185_s17 = smov 0   ;;  %s3187_s18 = smov 0  }
   0xd LB: > { %s2680_s19 = sadd.s32 4294967295, %s3112_s18   ;;  %s2681_s20 = sadd.s32 4294967294, %s3112_s18   ;;  %s3112_s18 = sphi %s3187_s18, %s27_s18   ;;  %s3108_s17 = sphi %s3185_s17, %s4366_s17   ;;  %s3104_s16 = sphi %s3183_s16, %s4365_s16   ;;  %s3100_s15 = sphi %s3181_s15, %s4364_s15   ;;  %s3096_s14 = sphi %s3179_s14, %s4363_s14   ;;  %s3092_s13 = sphi %s3177_s13, %s4362_s13  }
   0xe   : > { %s39_s21 = sadd.s32 1, %s3108_s17  ;;  %s256_s22 = sadd.s32 1, %s3100_s15 }
   0xf   : > { %p41_p0 = scmp.ge.s32.totalorder %s39_s21, 2  ;;  %p266_p1 = scmp.ne.s32.totalorder %s3100_s15, %s3096_s14 }
  0x10   : > { %p267_p2 = scmp.eq.s32.totalorder %s2680_s19, 1  ;;  %p272_p3 = scmp.ne.s32.totalorder %s3096_s14, %s3092_s13 }
  0x11   : > { %s4368_s21 = smov (%p41_p0, %s39_s21), 0  ;;  %p273_p5 = scmp.eq.s32.totalorder %s2681_s20, 1 }
  0x12   : > { %p3217_p4 = por %p267_p2, %p266_p1  ;;  %s251_s24 = ssub.s32 %s3108_s17, %s4368_s21 }
  0x13   : > { %p2684_p6 = scmp.ge.s32.totalorder %s3112_s18, 1  ;;  %p254_p7 = scmp.eq.s32.totalorder %s251_s24, 0 }
  0x14   : > { %p3224_p8 = por %p273_p5, %p272_p3  ;;  %p371_p9 = scmp.lt.s32.totalorder %s3112_s18, 3 }
  0x15   : > { %s3230_s26 = scalar_select %p254_p7, %s3100_s15, %s256_s22  }
  0x16   : > { %p372_p10 = pnand %p2684_p6, %p371_p9 }
  0x17   : > { %s4352_s3 = sld [smem:[#allocation12_spill]] (!%p372_p10)  ;;  %p432_p11 = scmp.lt.s32.totalorder (!%p372_p10), %s3104_s16, 1 }
  0x18   : > { %375 = sbr.rel (%p372_p10) target bundleno = 1084 (0x43c), region = 56  ;;  %s4353_s2 = sld [smem:[#allocation11_spill]] (!%p372_p10) }
  0x19   : > { %s4354_s0 = sld [smem:[#allocation9_spill]] (!%p372_p10)  ;;  %s3117_s30 = smov (!%p372_p10), 96  }
  0x1a   : > { %s4355_s1 = sld [smem:[#allocation10_spill]] (!%p372_p10)  ;;  %s3119_s22 = smov (!%p372_p10), 32  }
  0x1b   : > { %s4356_s5 = sld [smem:[#allocation14_spill]] (!%p372_p10) }
  0x1c   : > { %s4357_s4 = sld [smem:[#allocation13_spill]] (!%p372_p10) }
  0x1d   : > { %v466_v0 = vld [vmem:[%s4352_s3 + $0x8] sm:$0xff]  ;;  %v465_v1 = vld [vmem:[%s4352_s3] sm:$0xff]  ;;  %v3114_v2 = vmov 2   ;;  %v3115_v3 = vmov 1   ;;  %s3242_s11 = scalar_select %p432_p11, %s3104_s16, 1  ;;  %vm471_vm0 = vcmask 130048   ;;  %v514_v10 = vlaneseq }
  0x1e   : > { %2790 = vmatpush.msra.mxu2 %v466_v0  ;;  %2863 = vset.pattern.permute.xlu1 %v3114_v2  ;;  %v3116_v9 = vmov 0   ;;  %vm501_vm1 = vcmask 785408   ;;  %v3351_v46 = vld [vmem:[%s4339_s6 + $0x1] ss:$0 sm:$0xff]  ;;  %v3359_v49 = vld [vmem:[%s4339_s6 + $0x2] ss:$0 sm:$0xff] }
  0x1f   : > { %2862 = vset.pattern.permute.xlu0 %v3115_v3  ;;  %492 = vmatpush.msra.mxu0 %v466_v0  ;;  %s2787_s12 = sshll.u32 %s3242_s11, 7  ;;  %s2785_s19 = sshll.u32 %s3242_s11, 4  ;;  %v3268_v11 = vshrl.u32 %v514_v10, 7  ;;  %v3365_v50 = vld [vmem:[%s4339_s6] ss:$0 sm:$0xff]  ;;  %vm1149_vm2 = vcmask 261120  }
  0x20   : > { %2791 = vmatpush.msra.mxu2 %v465_v1  ;;  %2865 = vset.pattern.permute.xlu2 %v3115_v3  ;;  %s3250_s24 = scalar_lea.vmem %s4353_s2, %s2787_s12  ;;  %s3255_s29 = scalar_lea.vmem %s4354_s0, %s2785_s19  ;;  %v3376_v60 = vld [vmem:[%s4339_s6 + $0x3] ss:$0 sm:$0xff] }
  0x21   : > { %493 = vmatpush.msra.mxu0 %v465_v1  ;;  %v799_v4 = vld [vmem:[%s3250_s24] sm:$0xff]  ;;  %v464_v5 = vld [vmem:[%s3255_s29 + $0x8] sm:$0xff]  ;;  %s3273_s12 = scalar_lea.vmem %s4355_s1, %s2785_s19  ;;  %v801_v12 = vld [vmem:[%s3250_s24 + $0x10] sm:$0xff] }
  0x22   : > { %v463_v6 = vld [vmem:[%s3255_s29] sm:$0xff]  ;;  %1013 = vperm.xlu1 %2863, %v799_v4   ;;  %915 = vperm.xlu0 %2862, %v799_v4   ;;  %v800_v7 = vld [vmem:[%s3250_s24 + $0x8] sm:$0xff]  ;;  %v802_v17 = vld [vmem:[%s3250_s24 + $0x18] sm:$0xff] }
  0x23   : > { %2694 = vmatmul.msk.f32.vlgmr.msra.gmra.mxu2 %vm471_vm0, %v464_v5  ;;  %2693 = vmatmul.msk.f32.vlgmr.msra.gmra.mxu0 %vm471_vm0, %v463_v6  ;;  %v803_v8 = vld [vmem:[%s3250_s24 + $0x20] sm:$0xff]  ;;  %v3292_v18 = vld [vmem:[%s3250_s24 + $0x38] sm:$0xff]  ;;  %v804_v21 = vld [vmem:[%s3250_s24 + $0x28] sm:$0xff] }
  0x24   : > { %919 = vperm.xlu2 %2865, %v800_v7   ;;  %v3279_v13 = vld [vmem:[%s3273_s12] sm:$0xff]  ;;  %v805_v22 = vld [vmem:[%s3250_s24 + $0x30] sm:$0xff]  ;;  %v1146_v28 = vld [vmem:[%s4356_s5 + $0x18] sm:$0xff] }
  0x25   : > { %v541_v14 = vperm.slane %v3279_v13, 4  ;;  %v513_v15 = vperm.slane %v3279_v13, 0  ;;  %v520_v16 = vperm.slane %v3279_v13, 1  ;;  %v527_v19 = vperm.slane %v3279_v13, 2  ;;  %1210 = vmatpush.msrb.mxu2 %v1146_v28  ;;  %v2930_v29 = vld [vmem:[%s4357_s4] ss:$0 sm:$0xff] }
  0x26   : > { %v534_v20 = vperm.slane %v3279_v13, 3  ;;  %v548_v24 = vperm.slane %v3279_v13, 5  ;;  %v1145_v30 = vld [vmem:[%s4356_s5 + $0x10] sm:$0xff]  ;;  %v1144_v31 = vld [vmem:[%s4356_s5 + $0x8] sm:$0xff]  ;;  %v1143_v34 = vld [vmem:[%s4356_s5] sm:$0xff]  ;;  %v562_v48 = vperm.slane %v3279_v13, 7 }
  0x27   : > { %1211 = vmatpush.msrb.mxu2 %v1145_v30  ;;  %v3335_v37 = vld [vmem:[%s3250_s24 + $0x40] sm:$0xff]  ;;  %v808_v0 = vld [vmem:[%s3250_s24 + $0x48] sm:$0xff] }
  0x29   : > { %1212 = vmatpush.msrb.mxu2 %v1144_v31 }
  0x2a   : > { %2864 = vset.pattern.permute.xlu1 %v3116_v9  ;;  %2876 = vset.pattern.permute.xlu0 %v3114_v2 }
  0x2b   : > { %823 = vperm.xlu1 %2864, %v800_v7   ;;  %1029 = vperm.xlu0 %2876, %v803_v8  }
  0x2c   : > { %2866 = vset.pattern.permute.xlu2 %v3114_v2  ;;  %1213 = vmatpush.msrb.mxu2 %v1143_v34 }
  0x2d   : > { %1017 = vperm.xlu2 %2866, %v800_v7  }
  0x33   : > { %2868 = vset.pattern.permute.xlu1 %v3115_v3  ;;  %2881 = vset.pattern.permute.xlu0 %v3268_v11 }
  0x34   : > { %923 = vperm.xlu1 %2868, %v801_v12  }
  0x35   : > { %2867 = vset.pattern.permute.xlu2 %v3268_v11 }
  0x3b   : > { %546 = vperm.xlu0 %2881, %v541_v14  }
  0x3c   : > { %2870 = vset.pattern.permute.xlu1 %v3268_v11 }
  0x3d   : > { %518 = vperm.xlu2 %2867, %v513_v15  }
  0x43   : > { %2882 = vset.pattern.permute.xlu0 %v3116_v9 }
  0x44   : > { %818 = vperm.xlu0 %2882, %v799_v4   ;;  %525 = vperm.xlu1 %2870, %v520_v16  }
  0x45   : > { %2869 = vset.pattern.permute.xlu2 %v3114_v2 }
  0x46   : > { %1021 = vperm.xlu2 %2869, %v801_v12  }
  0x4c   : > { %828 = vperm.xlu0 %2882, %v801_v12   ;;  %2872 = vset.pattern.permute.xlu1 %v3114_v2 }
  0x4d   : > { %1025 = vperm.xlu1 %2872, %v802_v17  }
  0x4e   : > { %2871 = vset.pattern.permute.xlu2 %v3116_v9 }
  0x4f   : > { %833 = vperm.xlu2 %2871, %v802_v17  }
  0x54   : > { %853 = vperm.xlu0 %2882, %v3292_v18  }
  0x55   : > { %2874 = vset.pattern.permute.xlu1 %v3116_v9 }
  0x56   : > { %838 = vperm.xlu1 %2874, %v803_v8  }
  0x57   : > { %2873 = vset.pattern.permute.xlu2 %v3268_v11 }
  0x5c   : > { %2887 = vset.pattern.permute.xlu0 %v3115_v3 }
  0x5d   : > { %927 = vperm.xlu0 %2887, %v802_v17  }
  0x5e   : > { %2877 = vset.pattern.permute.xlu1 %v3268_v11 }
  0x5f   : > { %532 = vperm.xlu2 %2873, %v527_v19  }
  0x65   : > { %947 = vperm.xlu0 %2887, %v3335_v37  }
  0x66   : > { %539 = vperm.xlu1 %2877, %v534_v20   ;;  %v3393_v20 = vld [vmem:[%s3250_s24 + $0x50] sm:$0xff] }
  0x67   : > { %2875 = vset.pattern.permute.xlu2 %v3115_v3 }
  0x68   : > { %931 = vperm.xlu2 %2875, %v803_v8  }
  0x6d   : > { %2901 = vset.pattern.permute.xlu0 %v3114_v2 }
  0x6e   : > { %2879 = vset.pattern.permute.xlu1 %v3115_v3  ;;  %1049 = vperm.xlu0 %2901, %v808_v0  }
  0x6f   : > { %935 = vperm.xlu1 %2879, %v804_v21  }
  0x70   : > { %2878 = vset.pattern.permute.xlu2 %v3116_v9 }
  0x71   : > { %843 = vperm.xlu2 %2878, %v804_v21  }
  0x76   : > { %2906 = vset.pattern.permute.xlu0 %v3268_v11 }
  0x77   : > { %2883 = vset.pattern.permute.xlu1 %v3116_v9 }
  0x78   : > { %848 = vperm.xlu1 %2883, %v805_v22  }
  0x79   : > { %2880 = vset.pattern.permute.xlu2 %v3114_v2 }
  0x7a   : > { %1033 = vperm.xlu2 %2880, %v804_v21  }
  0x7e   : > { %v920_v23 = vpop.permute.xlu2 %919 }
  0x7f   : > { %v980_v52 = vmul.f32 %v3351_v46, %v920_v23 }
  0x80   : > { %2885 = vset.pattern.permute.xlu1 %v3114_v2 }
  0x81   : > { %1037 = vperm.xlu1 %2885, %v805_v22  }
  0x82   : > { %2884 = vset.pattern.permute.xlu2 %v3115_v3 }
  0x83   : > { %939 = vperm.xlu2 %2884, %v805_v22   ;;  %v555_v22 = vperm.slane %v3279_v13, 6 }
  0x87   : > { %v1018_v26 = vpop.permute.xlu2 %1017 }
  0x88   : > { %v1078_v58 = vmul.f32 %v3359_v49, %v1018_v26 }
  0x89   : > { %2893 = vset.pattern.permute.xlu1 %v3115_v3 }
  0x8b   : > { %2886 = vset.pattern.permute.xlu2 %v3268_v11 }
  0x93   : > { %553 = vperm.xlu2 %2886, %v548_v24  }
  0x94   : > { %v916_v25 = vpop.permute.xlu0 %915  ;;  %v1014_v27 = vpop.permute.xlu1 %1013 }
  0x95   : > { %v979_v51 = vmul.f32 %v3351_v46, %v916_v25  ;;  %v1077_v55 = vmul.f32 %v3359_v49, %v1014_v27 }
  0x97   : > { %v3332_v36 = vpop.permute.xlu2 %518 }
  0x9b   : > { %2894 = vset.pattern.permute.xlu2 %v3114_v2 }
  0x9c   : > { %1041 = vperm.xlu2 %2894, %v3292_v18  }
  0x9d   : > { %v3330_v35 = vpop.permute.xlu0 %1029  ;;  %v824_v38 = vpop.permute.xlu1 %823 }
  0x9e   : > { %v898_v53 = vmul.f32 %v3365_v50, %v824_v38 }
  0xa0   : > { %v495_v32 = vpop.f32.mrf.mxu0  ;;  %v1022_v42 = vpop.permute.xlu2 %1021  ;;  %v996_v59 = vadd.f32 %v980_v52, %v898_v53 }
  0xa1   : > { %v496_v33 = vadd.f32 %v2930_v29, %v495_v32  ;;  %v1079_v12 = vmul.f32 %v3359_v49, %v1022_v42  ;;  %v1081_v32 = vmul.f32 %v3359_v49, %v3330_v35 }
  0xa2   : > { %v1094_v1 = vadd.f32 %v1078_v58, %v996_v59 }
  0xa3   : > { %502 = vst.msk [vmem:[#allocation2] sm:$0xff] %vm501_vm1, %v496_v33 }
  0xa4   : > { %2896 = vset.pattern.permute.xlu2 %v3116_v9  ;;  %v1112_v15 = vadd.f32 %v3376_v60, %v1094_v1 }
  0xa5   : > { %858 = vperm.xlu2 %2896, %v3335_v37  }
  0xa6   : > { %v498_v39 = vpop.f32.mrf.mxu2  ;;  %v924_v44 = vpop.permute.xlu1 %923  ;;  %v1128_v19 = vmax.f32 %v1112_v15, 0.0 }
  0xa7   : > { %v499_v40 = vadd.f32 %v2930_v29, %v498_v39  ;;  %v981_v5 = vmul.f32 %v3351_v46, %v924_v44  ;;  %v810_v44 = vld [vmem:[%s3250_s24 + $0x58] sm:$0xff] }
  0xa9   : > { %503 = vst.msk [vmem:[#allocation2 + $0x8] sm:$0xff] %vm501_vm1, %v499_v40  ;;  %v834_v57 = vpop.permute.xlu2 %833 }
  0xaa   : > { %v3344_v43 = vld [vmem:[#allocation2] sm:$0xff]  ;;  %v900_v27 = vmul.f32 %v3365_v50, %v834_v57 }
  0xad   : > { %v3341_v41 = vpop.permute.xlu0 %546  ;;  %2898 = vset.pattern.permute.xlu2 %v3268_v11 }
  0xb0   : > { %v3346_v45 = vld [vmem:[#allocation2 + $0x8] sm:$0xff] }
  0xb1   : > { %v2888_v47 = vpack.i.bf16 %v3344_v43, %v3346_v45 }
  0xb3   : > { %2889 = vrot.lane.b32.xlu1 %v2888_v47, %s3117_s30 }
  0xb5   : > { %567 = vperm.xlu2 %2898, %v562_v48  }
  0xb6   : > { %v819_v54 = vpop.permute.xlu0 %818  ;;  %v3378_v62 = vpop.permute.xlu1 %525 }
  0xb7   : > { %v897_v56 = vmul.f32 %v3365_v50, %v819_v54 }
  0xb9   : > { %v995_v61 = vadd.f32 %v979_v51, %v897_v56  ;;  %v3389_v16 = vpop.permute.xlu2 %532  ;;  %v3423_v51 = vld [vmem:[%s3273_s12 + $0x8] sm:$0xff] }
  0xbb   : > { %v1093_v63 = vadd.f32 %v1077_v55, %v995_v61  ;;  %943 = vperm.xlu1 %2893, %v3292_v18   ;;  %v583_v61 = vperm.slane %v3423_v51, 2 }
  0xbd   : > { %v1111_v4 = vadd.f32 %v3376_v60, %v1093_v63  ;;  %2900 = vset.pattern.permute.xlu2 %v3115_v3 }
  0xbe   : > { %v829_v6 = vpop.permute.xlu0 %828  ;;  %951 = vperm.xlu2 %2900, %v808_v0  }
  0xbf   : > { %v1127_v7 = vmax.f32 %v1111_v4, 0.0  ;;  %v899_v8 = vmul.f32 %v3365_v50, %v829_v6  ;;  %v1026_v17 = vpop.permute.xlu1 %1025 }
  0xc0   : > { %v1080_v13 = vmul.f32 %v3359_v49, %v1026_v17 }
  0xc1   : > { %v997_v14 = vadd.f32 %v981_v5, %v899_v8  ;;  %2727 = vmatmul.msk.f32.vlgmr.msrb.gmra.mxu2 %vm1149_vm2, %v1127_v7  ;;  %v811_v8 = vld [vmem:[%s3250_s24 + $0x60] sm:$0xff] }
  0xc2   : > { %v932_v24 = vpop.permute.xlu2 %931 }
  0xc3   : > { %2895 = vset.pattern.permute.xlu1 %v3268_v11  ;;  %v1095_v18 = vadd.f32 %v1079_v12, %v997_v14  ;;  %v983_v29 = vmul.f32 %v3351_v46, %v932_v24  ;;  %v3460_v24 = vld [vmem:[%s3250_s24 + $0x78] sm:$0xff] }
  0xc5   : > { %v1113_v23 = vadd.f32 %v3376_v60, %v1095_v18 }
  0xc6   : > { %v3396_v21 = vpop.permute.xlu0 %853  ;;  %2903 = vset.pattern.permute.xlu2 %v3116_v9 }
  0xc7   : > { %868 = vperm.xlu2 %2903, %v3393_v20   ;;  %v1129_v25 = vmax.f32 %v1113_v23, 0.0  ;;  %v813_v23 = vld [vmem:[%s3250_s24 + $0x70] sm:$0xff] }
  0xc8   : > { %v839_v26 = vpop.permute.xlu1 %838 }
  0xc9   : > { %2728 = vmatmul.msk.f32.gmra.mxu2 %vm1149_vm2, %v1128_v19  ;;  %v901_v28 = vmul.f32 %v3365_v50, %v839_v26  ;;  %v812_v19 = vld [vmem:[%s3250_s24 + $0x68] sm:$0xff]  ;;  %s2789_s24 = sshll.u32 %s3104_s16, 7 }
  0xca   : > { %s2527_s27 = scalar_lea.hbm %s4343_s10, %s2789_s24 }
  0xcb   : > { %560 = vperm.xlu1 %2895, %v555_v22   ;;  %v999_v34 = vadd.f32 %v983_v29, %v901_v28  ;;  %v844_v39 = vpop.permute.xlu2 %843  ;;  %s2530_s28 = sshll.u32 %s2527_s27, 4  ;;  %s2531_s28 = int_to_ptr.hbm [resolvable:$true] %s2530_s28 }
  0xcc   : > { %v902_v54 = vmul.f32 %v3365_v50, %v844_v39 }
  0xcd   : > { %v1097_v40 = vadd.f32 %v1081_v32, %v999_v34 }
  0xcf   : > { %v928_v30 = vpop.permute.xlu0 %927  ;;  %2905 = vset.pattern.permute.xlu2 %v3114_v2  ;;  %v1115_v35 = vadd.f32 %v3376_v60, %v1097_v40 }
  0xd0   : > { %v982_v31 = vmul.f32 %v3351_v46, %v928_v30  ;;  %1053 = vperm.xlu2 %2905, %v3393_v20  }
  0xd1   : > { %2729 = vmatmul.msk.f32.gmra.mxu2 %vm1149_vm2, %v1129_v25  ;;  %v1131_v52 = vmax.f32 %v1115_v35, 0.0  ;;  %v590_v25 = vperm.slane %v3423_v51, 3 }
  0xd2   : > { %v998_v33 = vadd.f32 %v982_v31, %v900_v27  ;;  %v3469_v27 = vand.u32 127, %v514_v10  ;;  %v3118_v31 = vmov 0.0  }
  0xd3   : > { %2897 = vset.pattern.permute.xlu1 %v3114_v2 }
  0xd4   : > { %v1096_v38 = vadd.f32 %v1080_v13, %v998_v33  ;;  %1045 = vperm.xlu1 %2897, %v3335_v37   ;;  %v576_v37 = vperm.slane %v3423_v51, 1  ;;  %v1034_v53 = vpop.permute.xlu2 %1033  ;;  %vm627_vm3 = vcmp.eq.s32.totalorder %v3332_v36, %v3469_v27  ;;  %v611_v13 = vperm.slane %v3423_v51, 6 }
  0xd5   : > { %v1082_v57 = vmul.f32 %v3359_v49, %v1034_v53  ;;  %v2695_v10 = vsel %vm627_vm3, 1.0, %v3118_v31  ;;  %v904_v33 = vmul.f32 %v3365_v50, %v3396_v21  ;;  %vm628_vm4 = vcmp.eq.s32.totalorder %v3378_v62, %v3469_v27 }
  0xd6   : > { %v1114_v42 = vadd.f32 %v3376_v60, %v1096_v38  ;;  %581 = vperm.xlu0 %2906, %v576_v37   ;;  %v2696_v40 = vsel %vm628_vm4, 1.0, %v3118_v31  ;;  %vm629_vm5 = vcmp.eq.s32.totalorder %v3389_v16, %v3469_v27  ;;  %vm631_vm7 = vcmp.eq.s32.totalorder %v3341_v41, %v3469_v27 }
  0xd7   : > { %v2697_v62 = vsel %vm629_vm5, 1.0, %v3118_v31  ;;  %v948_v35 = vpop.permute.xlu0 %947 }
  0xd8   : > { %v1130_v47 = vmax.f32 %v1114_v42, 0.0  ;;  %v3417_v48 = vpop.permute.xlu1 %539  ;;  %2908 = vset.pattern.permute.xlu2 %v3115_v3  ;;  %v987_v16 = vmul.f32 %v3351_v46, %v948_v35 }
  0xd9   : > { %959 = vperm.xlu2 %2908, %v810_v44   ;;  %vm630_vm6 = vcmp.eq.s32.totalorder %v3417_v48, %v3469_v27 }
  0xda   : > { %2730 = vmatmul.msk.f32.gmra.mxu2 %vm1149_vm2, %v1130_v47 }
  0xdc   : > { %2899 = vset.pattern.permute.xlu1 %v3116_v9 }
  0xdd   : > { %863 = vperm.xlu1 %2899, %v808_v0   ;;  %v569_v0 = vperm.slane %v3423_v51, 0  ;;  %v940_v5 = vpop.permute.xlu2 %939 }
  0xde   : > { %2911 = vset.pattern.permute.xlu0 %v3116_v9  ;;  %v985_v7 = vmul.f32 %v3351_v46, %v940_v5 }
  0xdf   : > { %878 = vperm.xlu0 %2911, %v811_v8  }
  0xe1   : > { %v936_v55 = vpop.permute.xlu1 %935  ;;  %2910 = vset.pattern.permute.xlu2 %v3268_v11 }
  0xe2   : > { %v984_v56 = vmul.f32 %v3351_v46, %v936_v55  ;;  %2731 = vmatmul.msk.f32.gmra.mxu2 %vm1149_vm2, %v1131_v52  ;;  %v3504_v52 = vld [vmem:[%s4339_s6 + $0x4] ss:$0 sm:$0xff] }
  0xe4   : > { %v1000_v58 = vadd.f32 %v984_v56, %v902_v54  ;;  %v2698_v54 = vsel %vm630_vm6, 1.0, %v3118_v31 }
  0xe5   : > { %2902 = vset.pattern.permute.xlu1 %v3268_v11 }
  0xe6   : > { %v1098_v59 = vadd.f32 %v1082_v57, %v1000_v58 }
  0xe7   : > { %2916 = vset.pattern.permute.xlu0 %v3115_v3 }
  0xe8   : > { %v1116_v63 = vadd.f32 %v3376_v60, %v1098_v59  ;;  %967 = vperm.xlu0 %2916, %v812_v19  }
  0xe9   : > { %588 = vperm.xlu2 %2910, %v583_v61   ;;  %v2699_v61 = vsel %vm631_vm7, 1.0, %v3118_v31 }
  0xea   : > { %v849_v1 = vpop.permute.xlu1 %848  ;;  %v1132_v4 = vmax.f32 %v1116_v63, 0.0 }
  0xeb   : > { %v903_v6 = vmul.f32 %v3365_v50, %v849_v1 }
  0xec   : > { %2732 = vmatmul.msk.f32.gmra.mxu2 %vm1149_vm2, %v1132_v4  ;;  %v1050_v4 = vpop.permute.xlu0 %1049 }
  0xed   : > { %574 = vperm.xlu1 %2902, %v569_v0   ;;  %v1001_v12 = vadd.f32 %v985_v7, %v903_v6  ;;  %v3466_v26 = vpop.permute.xlu2 %553  ;;  %v1086_v7 = vmul.f32 %v3359_v49, %v1050_v4 }
  0xee   : > { %vm632_vm8 = vcmp.eq.s32.totalorder %v3466_v26, %v3469_v27 }
  0xf0   : > { %2921 = vset.pattern.permute.xlu0 %v3114_v2 }
  0xf1   : > { %2913 = vset.pattern.permute.xlu2 %v3114_v2  ;;  %1069 = vperm.xlu0 %2921, %v813_v23  }
  0xf2   : > { %1061 = vperm.xlu2 %2913, %v811_v8  }
  0xf3   : > { %v1038_v14 = vpop.permute.xlu1 %1037 }
  0xf4   : > { %v1083_v15 = vmul.f32 %v3359_v49, %v1038_v14 }
  0xf5   : > { %2904 = vset.pattern.permute.xlu1 %v3115_v3 }
  0xf6   : > { %v1099_v17 = vadd.f32 %v1083_v15, %v1001_v12  ;;  %955 = vperm.xlu1 %2904, %v3393_v20   ;;  %v597_v20 = vperm.slane %v3423_v51, 4  ;;  %v1042_v32 = vpop.permute.xlu2 %1041 }
  0xf7   : > { %v1084_v38 = vmul.f32 %v3359_v49, %v1042_v32 }
  0xf8   : > { %v1117_v18 = vadd.f32 %v3376_v60, %v1099_v17 }
  0xf9   : > { %2926 = vset.pattern.permute.xlu0 %v3268_v11 }
  0xfa   : > { %v1133_v22 = vmax.f32 %v1117_v18, 0.0  ;;  %2915 = vset.pattern.permute.xlu2 %v3116_v9 }
  0xfb   : > { %883 = vperm.xlu2 %2915, %v812_v19  }
  0xfc   : > { %2733 = vmatmul.msk.f32.gmra.mxu2 %vm1149_vm2, %v1133_v22 }
  0xfe   : > { %2907 = vset.pattern.permute.xlu1 %v3116_v9 }
  0xff   : > { %873 = vperm.xlu1 %2907, %v810_v44   ;;  %v859_v47 = vpop.permute.xlu2 %858 }
 0x100   : > { %v905_v37 = vmul.f32 %v3365_v50, %v859_v47 }
 0x101   : > { %616 = vperm.xlu0 %2926, %v611_v13  }
 0x102   : > { %v1003_v56 = vadd.f32 %v987_v16, %v905_v37 }
 0x103   : > { %2918 = vset.pattern.permute.xlu2 %v3268_v11 }
 0x107   : > { %2909 = vset.pattern.permute.xlu1 %v3114_v2 }
 0x108   : > { %1057 = vperm.xlu1 %2909, %v810_v44  }
 0x109   : > { %2928 = vset.pattern.permute.xlu0 %v3114_v2 }
 0x10b   : > { %602 = vperm.xlu2 %2918, %v597_v20   ;;  %v618_v20 = vperm.slane %v3423_v51, 7 }
 0x10f   : > { %v568_v53 = vpop.permute.xlu2 %567 }
 0x110   : > { %2912 = vset.pattern.permute.xlu1 %v3115_v3  ;;  %vm634_vm10 = vcmp.eq.s32.totalorder %v568_v53, %v3469_v27 }
 0x111   : > { %963 = vperm.xlu1 %2912, %v811_v8   ;;  %v2700_v8 = vsel %vm632_vm8, 1.0, %v3118_v31 }
 0x113   : > { %2920 = vset.pattern.permute.xlu2 %v3115_v3 }
 0x114   : > { %971 = vperm.xlu2 %2920, %v813_v23  }
 0x118   : > { %v952_v63 = vpop.permute.xlu2 %951 }
 0x119   : > { %2914 = vset.pattern.permute.xlu1 %v3268_v11  ;;  %v988_v5 = vmul.f32 %v3351_v46, %v952_v63 }
 0x11c   : > { %2923 = vset.pattern.permute.xlu2 %v3116_v9 }
 0x11d   : > { %893 = vperm.xlu2 %2923, %v3460_v24  }
 0x121   : > { %595 = vperm.xlu1 %2914, %v590_v25   ;;  %v869_v18 = vpop.permute.xlu2 %868 }
 0x125   : > { %v2890_v28 = vpop.permute.xlu1 %2889  ;;  %2925 = vset.pattern.permute.xlu2 %v3114_v2 }
 0x126   : > { %v2891_v29 = vunpack.i.l.bf16 %v2890_v28  ;;  %1073 = vperm.xlu2 %2925, %v3460_v24   ;;  %v2892_v30 = vunpack.i.h.bf16 %v2890_v28 }
 0x128   : > { %748 = vmatpush.msra.mxu1 %v2891_v29  ;;  %2792 = vmatpush.msra.mxu3 %v2891_v29 }
 0x129   : > { %2917 = vset.pattern.permute.xlu1 %v3114_v2  ;;  %v604_v2 = vperm.slane %v3423_v51, 5  ;;  %v2702_v51 = vsel %vm634_vm10, 1.0, %v3118_v31 }
 0x12a   : > { %1065 = vperm.xlu1 %2917, %v812_v19   ;;  %749 = vmatpush.msra.mxu1 %v2892_v30  ;;  %v1054_v26 = vpop.permute.xlu2 %1053 }
 0x12b   : > { %2793 = vmatpush.msra.mxu3 %v2892_v30  ;;  %2711 = vmatmul.msk.f32.vlgmr.msra.gmra.mxu1 %vm471_vm0, %v2695_v10  ;;  %v907_v30 = vmul.f32 %v3365_v50, %v869_v18  ;;  %v1087_v32 = vmul.f32 %v3359_v49, %v1054_v26 }
 0x12d   : > { %v944_v36 = vpop.permute.xlu1 %943 }
 0x12e   : > { %v986_v34 = vmul.f32 %v3351_v46, %v944_v36 }
 0x130   : > { %v1002_v39 = vadd.f32 %v986_v34, %v904_v33 }
 0x132   : > { %v1100_v42 = vadd.f32 %v1084_v38, %v1002_v39  ;;  %2919 = vset.pattern.permute.xlu1 %v3116_v9 }
 0x133   : > { %888 = vperm.xlu1 %2919, %v813_v23   ;;  %2712 = vmatmul.msk.f32.gmra.mxu1 %vm471_vm0, %v2696_v40  ;;  %v960_v34 = vpop.permute.xlu2 %959 }
 0x134   : > { %v1118_v21 = vadd.f32 %v3376_v60, %v1100_v42 }
 0x136   : > { %v1134_v44 = vmax.f32 %v1118_v21, 0.0 }
 0x138   : > { %2734 = vmatmul.msk.f32.gmra.mxu2 %vm1149_vm2, %v1134_v44 }
 0x13b   : > { %2922 = vset.pattern.permute.xlu1 %v3268_v11  ;;  %2713 = vmatmul.msk.f32.gmra.mxu1 %vm471_vm0, %v2697_v62 }
 0x13d   : > { %v561_v9 = vpop.permute.xlu1 %560 }
 0x13e   : > { %vm633_vm9 = vcmp.eq.s32.totalorder %v561_v9, %v3469_v27 }
 0x13f   : > { %v2701_v23 = vsel %vm633_vm9, 1.0, %v3118_v31 }
 0x143   : > { %609 = vperm.xlu1 %2922, %v604_v2   ;;  %2714 = vmatmul.msk.f32.gmra.mxu1 %vm471_vm0, %v2698_v54  ;;  %v589_v35 = vpop.permute.xlu2 %588  ;;  %v990_v2 = vmul.f32 %v3351_v46, %v960_v34 }
 0x144   : > { %v1215_v55 = vpop.f32.mrf.mxu2  ;;  %vm637_vm13 = vcmp.eq.s32.totalorder %v589_v35, %v3469_v27  ;;  %v1345_v35 = vld [vmem:[%s4356_s5 + $0x30] sm:$0xff] }
 0x145   : > { %v3509_v48 = vadd.f32 %v3504_v52, %v1215_v55  ;;  %v2705_v16 = vsel %vm637_vm13, 1.0, %v3118_v31 }
 0x146   : > { %v1046_v57 = vpop.permute.xlu1 %1045 }
 0x147   : > { %v1085_v58 = vmul.f32 %v3359_v49, %v1046_v57  ;;  %2157 = vrot.lane.b32.xlu2 %v3509_v48, %s3119_s22 }
 0x148   : > { %v582_v38 = vpop.permute.xlu0 %581 }
 0x149   : > { %v1101_v59 = vadd.f32 %v1085_v58, %v1003_v56  ;;  %vm636_vm12 = vcmp.eq.s32.totalorder %v582_v38, %v3469_v27 }
 0x14a   : > { %v2704_v44 = vsel %vm636_vm12, 1.0, %v3118_v31 }
 0x14b   : > { %2924 = vset.pattern.permute.xlu1 %v3115_v3  ;;  %2715 = vmatmul.msk.f32.gmra.mxu1 %vm471_vm0, %v2699_v61  ;;  %v1119_v0 = vadd.f32 %v3376_v60, %v1101_v59 }
 0x14c   : > { %975 = vperm.xlu1 %2924, %v3460_v24   ;;  %v1218_v1 = vpop.f32.mrf.mxu2 }
 0x14d   : > { %v1135_v41 = vmax.f32 %v1119_v0, 0.0  ;;  %v3549_v28 = vadd.f32 %v3504_v52, %v1218_v1  ;;  %v1062_v1 = vpop.permute.xlu2 %1061 }
 0x14e   : > { %v1089_v4 = vmul.f32 %v3359_v49, %v1062_v1 }
 0x14f   : > { %2735 = vmatmul.msk.f32.gmra.mxu2 %vm1149_vm2, %v1135_v41  ;;  %v864_v6 = vpop.permute.xlu1 %863 }
 0x150   : > { %v906_v3 = vmul.f32 %v3365_v50, %v864_v6 }
 0x151   : > { %v879_v58 = vpop.permute.xlu0 %878 }
 0x152   : > { %v1004_v12 = vadd.f32 %v988_v5, %v906_v3  ;;  %v909_v0 = vmul.f32 %v3365_v50, %v879_v58 }
 0x153   : > { %2716 = vmatmul.msk.f32.gmra.mxu1 %vm471_vm0, %v2700_v8 }
 0x154   : > { %v1102_v14 = vadd.f32 %v1086_v7, %v1004_v12  ;;  %2927 = vset.pattern.permute.xlu1 %v3268_v11  ;;  %v1221_v15 = vpop.f32.mrf.mxu2 }
 0x155   : > { %v3531_v17 = vadd.f32 %v3504_v52, %v1221_v15  ;;  %v884_v12 = vpop.permute.xlu2 %883 }
 0x156   : > { %v1120_v19 = vadd.f32 %v3376_v60, %v1102_v14 }
 0x157   : > { %2161 = vrot.lane.b32.xlu2 %v3531_v17, %s3119_s22 }
 0x158   : > { %v1136_v22 = vmax.f32 %v1120_v19, 0.0  ;;  %v910_v19 = vmul.f32 %v3365_v50, %v884_v12 }
 0x15a   : > { %2736 = vmatmul.msk.f32.gmra.mxu2 %vm1149_vm2, %v1136_v22  ;;  %v968_v15 = vpop.permute.xlu0 %967 }
 0x15b   : > { %2717 = vmatmul.msk.f32.gmra.mxu1 %vm471_vm0, %v2701_v23 }
 0x15c   : > { %623 = vperm.xlu1 %2927, %v618_v20   ;;  %v992_v20 = vmul.f32 %v3351_v46, %v968_v15 }
 0x15d   : > { %v1224_v11 = vpop.f32.mrf.mxu2 }
 0x15e   : > { %v3542_v24 = vadd.f32 %v3504_v52, %v1224_v11  ;;  %v1008_v11 = vadd.f32 %v992_v20, %v910_v19  ;;  %v1265_v19 = vrot.slane %v3344_v43, 1 }
 0x15f   : > { %v575_v25 = vpop.permute.xlu1 %574 }
 0x160   : > { %2163 = vrot.lane.b32.xlu0 %v3542_v24, %s3119_s22  ;;  %vm635_vm11 = vcmp.eq.s32.totalorder %v575_v25, %v3469_v27 }
 0x161   : > { %v2703_v36 = vsel %vm635_vm11, 1.0, %v3118_v31 }
 0x163   : > { %2718 = vmatmul.msk.f32.gmra.mxu1 %vm471_vm0, %v2702_v51 }
 0x164   : > { %2159 = vrot.lane.b32.xlu1 %v3549_v28, %s3119_s22 }
 0x165   : > { %v1227_v29 = vpop.f32.mrf.mxu2  ;;  %v603_v22 = vpop.permute.xlu2 %602 }
 0x166   : > { %v3557_v10 = vadd.f32 %v3504_v52, %v1227_v29  ;;  %vm639_vm15 = vcmp.eq.s32.totalorder %v603_v22, %v3469_v27 }
 0x167   : > { %v2707_v23 = vsel %vm639_vm15, 1.0, %v3118_v31 }
 0x168   : > { %v956_v13 = vpop.permute.xlu1 %955 }
 0x169   : > { %v989_v33 = vmul.f32 %v3351_v46, %v956_v13 }
 0x16b   : > { %v1005_v39 = vadd.f32 %v989_v33, %v907_v30  ;;  %2719 = vmatmul.msk.f32.gmra.mxu1 %vm471_vm0, %v2703_v36 }
 0x16c   : > { %2165 = vrot.lane.b32.xlu1 %v3557_v10, %s3119_s22 }
 0x16d   : > { %v1103_v40 = vadd.f32 %v1087_v32, %v1005_v39  ;;  %v1070_v32 = vpop.permute.xlu0 %1069 }
 0x16e   : > { %v972_v30 = vpop.permute.xlu2 %971  ;;  %v1091_v38 = vmul.f32 %v3359_v49, %v1070_v32 }
 0x16f   : > { %v1230_v42 = vpop.f32.mrf.mxu2  ;;  %v1121_v21 = vadd.f32 %v3376_v60, %v1103_v40  ;;  %v993_v33 = vmul.f32 %v3351_v46, %v972_v30 }
 0x170   : > { %v3569_v47 = vadd.f32 %v3504_v52, %v1230_v42 }
 0x171   : > { %v874_v62 = vpop.permute.xlu1 %873  ;;  %v1137_v9 = vmax.f32 %v1121_v21, 0.0 }
 0x172   : > { %2167 = vrot.lane.b32.xlu2 %v3569_v47, %s3119_s22  ;;  %v908_v37 = vmul.f32 %v3365_v50, %v874_v62 }
 0x173   : > { %2720 = vmatmul.msk.f32.gmra.mxu1 %vm471_vm0, %v2704_v44  ;;  %2737 = vmatmul.msk.f32.gmra.mxu2 %vm1149_vm2, %v1137_v9  ;;  %v1346_v9 = vld [vmem:[%s4356_s5 + $0x38] sm:$0xff] }
 0x174   : > { %v1006_v54 = vadd.f32 %v990_v2, %v908_v37  ;;  %1409 = vmatpush.msrb.mxu3 %v1346_v9  ;;  %v1272_v9 = vrot.slane %v3346_v45, 1 }
 0x176   : > { %1410 = vmatpush.msrb.mxu3 %v1345_v35  ;;  %v1268_v35 = vrot.slane %v3344_v43, 4 }
 0x177   : > { %v894_v2 = vpop.permute.xlu2 %893 }
 0x17a   : > { %v1058_v53 = vpop.permute.xlu1 %1057 }
 0x17b   : > { %v1088_v55 = vmul.f32 %v3359_v49, %v1058_v53  ;;  %2721 = vmatmul.msk.f32.gmra.mxu1 %vm471_vm0, %v2705_v16  ;;  %v1344_v16 = vld [vmem:[%s4356_s5 + $0x28] sm:$0xff] }
 0x17c   : > { %1411 = vmatpush.msrb.mxu3 %v1344_v16  ;;  %v1283_v16 = vperm.slane %v1268_v35, 0 }
 0x17d   : > { %v1104_v56 = vadd.f32 %v1088_v55, %v1006_v54  ;;  %v617_v54 = vpop.permute.xlu0 %616 }
 0x17e   : > { %vm641_vm3 = vcmp.eq.s32.totalorder %v617_v54, %v3469_v27 }
 0x17f   : > { %v1233_v57 = vpop.f32.mrf.mxu2  ;;  %v1122_v59 = vadd.f32 %v3376_v60, %v1104_v56  ;;  %v1343_v56 = vld [vmem:[%s4356_s5 + $0x20] sm:$0xff] }
 0x180   : > { %v3583_v61 = vadd.f32 %v3504_v52, %v1233_v57  ;;  %1412 = vmatpush.msrb.mxu3 %v1343_v56 }
 0x181   : > { %v1138_v63 = vmax.f32 %v1122_v59, 0.0  ;;  %v912_v59 = vmul.f32 %v3365_v50, %v894_v2 }
 0x182   : > { %2169 = vrot.lane.b32.xlu0 %v3583_v61, %s3119_s22 }
 0x183   : > { %2738 = vmatmul.msk.f32.gmra.mxu2 %vm1149_vm2, %v1138_v63  ;;  %v964_v41 = vpop.permute.xlu1 %963  ;;  %v2709_v63 = vsel %vm641_vm3, 1.0, %v3118_v31 }
 0x184   : > { %v991_v5 = vmul.f32 %v3351_v46, %v964_v41 }
 0x186   : > { %v1007_v6 = vadd.f32 %v991_v5, %v909_v0  ;;  %v1074_v0 = vpop.permute.xlu2 %1073 }
 0x187   : > { %v1092_v41 = vmul.f32 %v3359_v49, %v1074_v0 }
 0x188   : > { %v1105_v3 = vadd.f32 %v1089_v4, %v1007_v6 }
 0x18a   : > { %v1123_v7 = vadd.f32 %v3376_v60, %v1105_v3 }
 0x18c   : > { %v1139_v8 = vmax.f32 %v1123_v7, 0.0 }
 0x18e   : > { %2739 = vmatmul.msk.f32.gmra.mxu2 %vm1149_vm2, %v1139_v8 }
 0x193   : > { %v596_v14 = vpop.permute.xlu1 %595 }
 0x194   : > { %vm638_vm14 = vcmp.eq.s32.totalorder %v596_v14, %v3469_v27 }
 0x195   : > { %v2706_v18 = vsel %vm638_vm14, 1.0, %v3118_v31 }
 0x196   : > { %2722 = vmatmul.msk.f32.gmra.mxu1 %vm471_vm0, %v2706_v18 }
 0x19c   : > { %v1066_v25 = vpop.permute.xlu1 %1065 }
 0x19d   : > { %v1090_v26 = vmul.f32 %v3359_v49, %v1066_v25 }
 0x19e   : > { %2723 = vmatmul.msk.f32.gmra.mxu1 %vm471_vm0, %v2707_v23  ;;  %v1271_v23 = vrot.slane %v3344_v43, 7 }
 0x19f   : > { %v1106_v51 = vadd.f32 %v1090_v26, %v1008_v11  ;;  %v1266_v11 = vrot.slane %v3344_v43, 2 }
 0x1a1   : > { %v1124_v29 = vadd.f32 %v3376_v60, %v1106_v51  ;;  %v1281_v30 = vperm.slane %v1266_v11, 0 }
 0x1a3   : > { %v1140_v13 = vmax.f32 %v1124_v29, 0.0  ;;  %v1286_v29 = vperm.slane %v1271_v23, 0  ;;  %v2158_v23 = vpop.permute.xlu2 %2157 }
 0x1a5   : > { %2740 = vmatmul.msk.f32.gmra.mxu2 %vm1149_vm2, %v1140_v13  ;;  %v889_v36 = vpop.permute.xlu1 %888 }
 0x1a6   : > { %v911_v34 = vmul.f32 %v3365_v50, %v889_v36  ;;  %v1267_v36 = vrot.slane %v3344_v43, 3 }
 0x1a8   : > { %v1009_v39 = vadd.f32 %v993_v33, %v911_v34  ;;  %v3607_v40 = vpop.f32.mrf.mxu1 }
 0x1aa   : > { %v1107_v42 = vadd.f32 %v1091_v38, %v1009_v39  ;;  %v1287_v38 = vperm.slane %v3346_v45, 0  ;;  %v1282_v39 = vperm.slane %v1267_v36, 0 }
 0x1ac   : > { %v1125_v21 = vadd.f32 %v3376_v60, %v1107_v42 }
 0x1ae   : > { %v1141_v44 = vmax.f32 %v1125_v21, 0.0 }
 0x1b0   : > { %v3610_v62 = vpop.f32.mrf.mxu1  ;;  %2741 = vmatmul.msk.f32.gmra.mxu2 %vm1149_vm2, %v1141_v44 }
 0x1b5   : > { %v610_v37 = vpop.permute.xlu1 %609 }
 0x1b6   : > { %vm640_vm1 = vcmp.eq.s32.totalorder %v610_v37, %v3469_v27  ;;  %v1288_v37 = vperm.slane %v1272_v9, 0  ;;  %v1277_v9 = vrot.slane %v3346_v45, 6 }
 0x1b7   : > { %v2708_v53 = vsel %vm640_vm1, 1.0, %v3118_v31 }
 0x1b8   : > { %v3624_v55 = vpop.f32.mrf.mxu1  ;;  %2724 = vmatmul.msk.f32.gmra.mxu1 %vm471_vm0, %v2708_v53 }
 0x1b9   : > { %v1313_v32 = vsub.f32 %v1281_v30, %v3624_v55 }
 0x1bb   : > { %v1236_v57 = vpop.f32.mrf.mxu2  ;;  %v1329_v34 = vadd.f32 %v1313_v32, %v3531_v17  ;;  %v1276_v32 = vrot.slane %v3346_v45, 5 }
 0x1bc   : > { %v1237_v58 = vadd.f32 %v3504_v52, %v1236_v57  ;;  %v1269_v57 = vrot.slane %v3344_v43, 5 }
 0x1be   : > { %2171 = vrot.lane.b32.xlu1 %v1237_v58, %s3119_s22  ;;  %v976_v1 = vpop.permute.xlu1 %975  ;;  %v1284_v0 = vperm.slane %v1269_v57, 0 }
 0x1bf   : > { %v994_v4 = vmul.f32 %v3351_v46, %v976_v1  ;;  %v1279_v46 = vperm.slane %v3344_v43, 0  ;;  %v1270_v1 = vrot.slane %v3344_v43, 6 }
 0x1c0   : > { %v3637_v5 = vpop.f32.mrf.mxu1  ;;  %2725 = vmatmul.msk.f32.gmra.mxu1 %vm471_vm0, %v2709_v63 }
 0x1c1   : > { %v1010_v6 = vadd.f32 %v994_v4, %v912_v59  ;;  %v1311_v18 = vsub.f32 %v1279_v46, %v3607_v40  ;;  %v1314_v21 = vsub.f32 %v1282_v39, %v3637_v5  ;;  %v1285_v4 = vperm.slane %v1270_v1, 0 }
 0x1c2   : > { %v1292_v39 = vperm.slane %v1276_v32, 0  ;;  %v1278_v1 = vrot.slane %v3346_v45, 7 }
 0x1c3   : > { %v1108_v3 = vadd.f32 %v1092_v41, %v1010_v6  ;;  %v1327_v22 = vadd.f32 %v1311_v18, %v3509_v48  ;;  %v1330_v2 = vadd.f32 %v1314_v21, %v3542_v24 }
 0x1c5   : > { %v1126_v7 = vadd.f32 %v3376_v60, %v1108_v3 }
 0x1c7   : > { %v1142_v8 = vmax.f32 %v1126_v7, 0.0 }
 0x1c8   : > { %v3641_v50 = vpop.f32.mrf.mxu1 }
 0x1c9   : > { %2742 = vmatmul.msk.f32.gmra.mxu2 %vm1149_vm2, %v1142_v8  ;;  %v1315_v54 = vsub.f32 %v1283_v16, %v3641_v50  ;;  %v1478_v16 = vld [vmem:[%s4356_s5 + $0x40] sm:$0xff] }
 0x1cb   : > { %v1331_v59 = vadd.f32 %v1315_v54, %v3557_v10 }
 0x1ce   : > { %v624_v12 = vpop.permute.xlu1 %623 }
 0x1cf   : > { %vm642_vm4 = vcmp.eq.s32.totalorder %v624_v12, %v3469_v27  ;;  %v1273_v12 = vrot.slane %v3346_v45, 2 }
 0x1d0   : > { %v2710_v49 = vsel %vm642_vm4, 1.0, %v3118_v31  ;;  %v3646_v14 = vpop.f32.mrf.mxu1  ;;  %v1280_v31 = vperm.slane %v1265_v19, 0 }
 0x1d1   : > { %2726 = vmatmul.msk.f32.vlgmr.msra.gmra.mxu3 %vm471_vm0, %v2710_v49  ;;  %v1316_v24 = vsub.f32 %v1284_v0, %v3646_v14 }
 0x1d2   : > { %v1239_v15 = vpop.f32.mrf.mxu2  ;;  %v1312_v20 = vsub.f32 %v1280_v31, %v3610_v62 }
 0x1d3   : > { %v1240_v60 = vadd.f32 %v3504_v52, %v1239_v15  ;;  %v1332_v41 = vadd.f32 %v1316_v24, %v3569_v47  ;;  %v1274_v15 = vrot.slane %v3346_v45, 3 }
 0x1d4   : > { %v1328_v51 = vadd.f32 %v1312_v20, %v3549_v28  ;;  %v1275_v20 = vrot.slane %v3346_v45, 4  ;;  %v3771_v45 = vld [vmem:[%s4339_s6 + $0x5] ss:$0 sm:$0xff] }
 0x1d5   : > { %2173 = vrot.lane.b32.xlu2 %v1240_v60, %s3119_s22  ;;  %v1290_v19 = vperm.slane %v1274_v15, 0 }
 0x1d8   : > { %v3655_v27 = vpop.f32.mrf.mxu1 }
 0x1d9   : > { %2743 = vmatmul.msk.f32.vlgmr.msrb.gmra.mxu3 %vm1149_vm2, %v1327_v22  ;;  %v1317_v6 = vsub.f32 %v1285_v4, %v3655_v27 }
 0x1db   : > { %v1333_v10 = vadd.f32 %v1317_v6, %v3583_v61  ;;  %v1289_v61 = vperm.slane %v1273_v12, 0  ;;  %v1294_v6 = vperm.slane %v1278_v1, 0 }
 0x1dd   : > { %v1242_v25 = vpop.f32.mrf.mxu2 }
 0x1de   : > { %v1243_v26 = vadd.f32 %v3504_v52, %v1242_v25 }
 0x1e0   : > { %2175 = vrot.lane.b32.xlu0 %v1243_v26, %s3119_s22  ;;  %v3664_v48 = vpop.f32.mrf.mxu1 }
 0x1e1   : > { %v1318_v13 = vsub.f32 %v1286_v29, %v3664_v48  ;;  %2744 = vmatmul.msk.f32.gmra.mxu3 %vm1149_vm2, %v1328_v51  ;;  %v1291_v51 = vperm.slane %v1275_v20, 0 }
 0x1e3   : > { %v1334_v33 = vadd.f32 %v1318_v13, %v1237_v58 }
 0x1e8   : > { %v3672_v28 = vpop.f32.mrf.mxu1 }
 0x1e9   : > { %v1319_v42 = vsub.f32 %v1287_v38, %v3672_v28  ;;  %2745 = vmatmul.msk.f32.gmra.mxu3 %vm1149_vm2, %v1329_v34  ;;  %v2160_v34 = vpop.permute.xlu1 %2159 }
 0x1eb   : > { %v1335_v44 = vadd.f32 %v1319_v42, %v1240_v60  ;;  %v1481_v42 = vld [vmem:[%s4356_s5 + $0x58] sm:$0xff] }
 0x1ec   : > { %1544 = vmatpush.msrb.mxu0 %v1481_v42 }
 0x1f0   : > { %v3680_v17 = vpop.f32.mrf.mxu1 }
 0x1f1   : > { %v1320_v53 = vsub.f32 %v1288_v37, %v3680_v17  ;;  %2746 = vmatmul.msk.f32.gmra.mxu3 %vm1149_vm2, %v1330_v2  ;;  %v1479_v37 = vld [vmem:[%s4356_s5 + $0x48] sm:$0xff] }
 0x1f3   : > { %v1336_v56 = vadd.f32 %v1320_v53, %v1243_v26  ;;  %v2205_v26 = vadd.f32 %v2158_v23, %v3607_v40  ;;  %v2166_v53 = vpop.permute.xlu1 %2165 }
 0x1f6   : > { %v1245_v58 = vpop.f32.mrf.mxu2 }
 0x1f7   : > { %v1246_v63 = vadd.f32 %v3504_v52, %v1245_v58  ;;  %v2209_v58 = vadd.f32 %v2166_v53, %v3641_v50 }
 0x1f8   : > { %v3703_v47 = vpop.f32.mrf.mxu1 }
 0x1f9   : > { %2177 = vrot.lane.b32.xlu1 %v1246_v63, %s3119_s22  ;;  %2747 = vmatmul.msk.f32.gmra.mxu3 %vm1149_vm2, %v1331_v59  ;;  %v1321_v49 = vsub.f32 %v1289_v61, %v3703_v47 }
 0x1fb   : > { %v1337_v18 = vadd.f32 %v1321_v49, %v1246_v63 }
 0x201   : > { %2748 = vmatmul.msk.f32.gmra.mxu3 %vm1149_vm2, %v1332_v41  ;;  %v2162_v41 = vpop.permute.xlu2 %2161 }
 0x206   : > { %v1248_v3 = vpop.f32.mrf.mxu2 }
 0x207   : > { %v1249_v7 = vadd.f32 %v3504_v52, %v1248_v3 }
 0x209   : > { %2179 = vrot.lane.b32.xlu2 %v1249_v7, %s3119_s22  ;;  %2749 = vmatmul.msk.f32.gmra.mxu3 %vm1149_vm2, %v1333_v10  ;;  %v2207_v10 = vadd.f32 %v2162_v41, %v3624_v55 }
 0x211   : > { %v1251_v8 = vpop.f32.mrf.mxu2  ;;  %2750 = vmatmul.msk.f32.gmra.mxu3 %vm1149_vm2, %v1334_v33  ;;  %v2164_v33 = vpop.permute.xlu0 %2163 }
 0x212   : > { %v1252_v43 = vadd.f32 %v3504_v52, %v1251_v8  ;;  %v2208_v40 = vadd.f32 %v2164_v33, %v3637_v5  ;;  %v1480_v5 = vld [vmem:[%s4356_s5 + $0x50] sm:$0xff] }
 0x213   : > { %v3708_v46 = vpop.f32.mrf.mxu1  ;;  %1545 = vmatpush.msrb.mxu0 %v1480_v5 }
 0x214   : > { %2181 = vrot.lane.b32.xlu0 %v1252_v43, %s3119_s22  ;;  %v1322_v31 = vsub.f32 %v1290_v19, %v3708_v46 }
 0x215   : > { %1546 = vmatpush.msrb.mxu0 %v1479_v37 }
 0x216   : > { %v1338_v25 = vadd.f32 %v1322_v31, %v1249_v7 }
 0x217   : > { %1547 = vmatpush.msrb.mxu0 %v1478_v16 }
 0x219   : > { %2751 = vmatmul.msk.f32.gmra.mxu3 %vm1149_vm2, %v1335_v44  ;;  %v2206_v44 = vadd.f32 %v2160_v34, %v3610_v62  ;;  %v2170_v35 = vpop.permute.xlu0 %2169 }
 0x21a   : > { %v2211_v54 = vadd.f32 %v2170_v35, %v3655_v27 }
 0x21b   : > { %v3716_v11 = vpop.f32.mrf.mxu1 }
 0x21c   : > { %v1323_v29 = vsub.f32 %v1291_v51, %v3716_v11 }
 0x21e   : > { %v1339_v38 = vadd.f32 %v1323_v29, %v1252_v43 }
 0x221   : > { %2752 = vmatmul.msk.f32.gmra.mxu3 %vm1149_vm2, %v1336_v56  ;;  %v1293_v56 = vperm.slane %v1277_v9, 0 }
 0x228   : > { %v1254_v60 = vpop.f32.mrf.mxu2 }
 0x229   : > { %v1255_v22 = vadd.f32 %v3504_v52, %v1254_v60  ;;  %2753 = vmatmul.msk.f32.gmra.mxu3 %vm1149_vm2, %v1337_v18 }
 0x22b   : > { %2183 = vrot.lane.b32.xlu1 %v1255_v22, %s3119_s22 }
 0x230   : > { %v2172_v63 = vpop.permute.xlu1 %2171 }
 0x231   : > { %2754 = vmatmul.msk.f32.gmra.mxu3 %vm1149_vm2, %v1338_v25  ;;  %v2212_v0 = vadd.f32 %v2172_v63, %v3664_v48 }
 0x233   : > { %v1257_v30 = vpop.f32.mrf.mxu2  ;;  %2237 = vrot.lane.b32.xlu1 %v2205_v26, %s3117_s30 }
 0x234   : > { %v1258_v13 = vadd.f32 %v3504_v52, %v1257_v30 }
 0x235   : > { %v3724_v36 = vpop.f32.mrf.mxu1 }
 0x236   : > { %2185 = vrot.lane.b32.xlu2 %v1258_v13, %s3119_s22  ;;  %v1324_v21 = vsub.f32 %v1292_v39, %v3724_v36 }
 0x238   : > { %v1340_v2 = vadd.f32 %v1324_v21, %v1255_v22 }
 0x239   : > { %2755 = vmatmul.msk.f32.gmra.mxu3 %vm1149_vm2, %v1339_v38 }
 0x23b   : > { %2243 = vrot.lane.b32.xlu1 %v2208_v40, %s3117_s30 }
 0x23d   : > { %v3746_v62 = vpop.f32.mrf.mxu1 }
 0x23e   : > { %2239 = vrot.lane.b32.xlu2 %v2206_v44, %s3117_s30  ;;  %v1325_v57 = vsub.f32 %v1293_v56, %v3746_v62 }
 0x240   : > { %v1341_v59 = vadd.f32 %v1325_v57, %v1258_v13 }
 0x241   : > { %2756 = vmatmul.msk.f32.gmra.mxu3 %vm1149_vm2, %v1340_v2 }
 0x243   : > { %2249 = vrot.lane.b32.xlu1 %v2211_v54, %s3117_s30 }
 0x246   : > { %2245 = vrot.lane.b32.xlu2 %v2209_v58, %s3117_s30 }
 0x249   : > { %2757 = vmatmul.msk.f32.gmra.mxu3 %vm1149_vm2, %v1341_v59 }
 0x24c   : > { %v1260_v24 = vpop.f32.mrf.mxu2 }
 0x24d   : > { %v1261_v27 = vadd.f32 %v3504_v52, %v1260_v24 }
 0x24e   : > { %2251 = vrot.lane.b32.xlu2 %v2212_v0, %s3117_s30 }
 0x24f   : > { %2187 = vrot.lane.b32.xlu0 %v1261_v27, %s3119_s22 }
 0x252   : > { %v2176_v4 = vpop.permute.xlu0 %2175 }
 0x253   : > { %v2214_v50 = vadd.f32 %v2176_v4, %v3680_v17  ;;  %v2168_v17 = vpop.permute.xlu2 %2167 }
 0x254   : > { %v3761_v3 = vpop.f32.mrf.mxu3  ;;  %v2210_v8 = vadd.f32 %v2168_v17, %v3646_v14 }
 0x255   : > { %v1326_v48 = vsub.f32 %v1294_v6, %v3761_v3  ;;  %2255 = vrot.lane.b32.xlu1 %v2214_v50, %s3117_s30 }
 0x257   : > { %v1342_v52 = vadd.f32 %v1326_v48, %v1261_v27  ;;  %2241 = vrot.lane.b32.xlu0 %v2207_v10, %s3117_s30 }
 0x259   : > { %2758 = vmatmul.msk.f32.gmra.mxu3 %vm1149_vm2, %v1342_v52  ;;  %v3822_v52 = vld [vmem:[%s4339_s6 + $0x6] ss:$0 sm:$0xff] }
 0x25b   : > { %v2174_v12 = vpop.permute.xlu2 %2173 }
 0x25c   : > { %v1414_v7 = vpop.f32.mrf.mxu3  ;;  %v2213_v49 = vadd.f32 %v2174_v12, %v3672_v28 }
 0x25d   : > { %v1415_v55 = vadd.f32 %v3771_v45, %v1414_v7 }
 0x25f   : > { %v1462_v43 = vmax.f32 %v1415_v55, 0.0  ;;  %2247 = vrot.lane.b32.xlu0 %v2210_v8, %s3117_s30 }
 0x261   : > { %2759 = vmatmul.msk.f32.vlgmr.msrb.gmra.mxu0 %vm1149_vm2, %v1462_v43 }
 0x263   : > { %v2180_v60 = vpop.permute.xlu2 %2179 }
 0x264   : > { %v1417_v61 = vpop.f32.mrf.mxu3  ;;  %v2216_v31 = vadd.f32 %v2180_v60, %v3708_v46 }
 0x265   : > { %v1418_v15 = vadd.f32 %v3771_v45, %v1417_v61 }
 0x267   : > { %v1463_v18 = vmax.f32 %v1418_v15, 0.0  ;;  %2253 = vrot.lane.b32.xlu0 %v2213_v49, %s3117_s30 }
 0x269   : > { %2760 = vmatmul.msk.f32.gmra.mxu0 %vm1149_vm2, %v1463_v18 }
 0x26b   : > { %v2178_v14 = vpop.permute.xlu1 %2177 }
 0x26c   : > { %v2215_v19 = vadd.f32 %v2178_v14, %v3703_v47  ;;  %v1420_v22 = vpop.f32.mrf.mxu3 }
 0x26d   : > { %v1421_v20 = vadd.f32 %v3771_v45, %v1420_v22 }
 0x26e   : > { %2257 = vrot.lane.b32.xlu2 %v2215_v19, %s3117_s30 }
 0x26f   : > { %v1464_v23 = vmax.f32 %v1421_v20, 0.0  ;;  %2259 = vrot.lane.b32.xlu0 %v2216_v31, %s3117_s30 }
 0x271   : > { %2761 = vmatmul.msk.f32.gmra.mxu0 %vm1149_vm2, %v1464_v23 }
 0x274   : > { %v1423_v28 = vpop.f32.mrf.mxu3 }
 0x275   : > { %v1424_v25 = vadd.f32 %v3771_v45, %v1423_v28 }
 0x277   : > { %v1465_v26 = vmax.f32 %v1424_v25, 0.0 }
 0x279   : > { %2762 = vmatmul.msk.f32.gmra.mxu0 %vm1149_vm2, %v1465_v26 }
 0x27c   : > { %v1426_v51 = vpop.f32.mrf.mxu3 }
 0x27d   : > { %v1427_v47 = vadd.f32 %v3771_v45, %v1426_v51 }
 0x27f   : > { %v1466_v29 = vmax.f32 %v1427_v47, 0.0 }
 0x281   : > { %2763 = vmatmul.msk.f32.gmra.mxu0 %vm1149_vm2, %v1466_v29 }
 0x284   : > { %v1429_v46 = vpop.f32.mrf.mxu3 }
 0x285   : > { %v1430_v30 = vadd.f32 %v3771_v45, %v1429_v46 }
 0x286   : > { %v2182_v13 = vpop.permute.xlu0 %2181 }
 0x287   : > { %v1467_v32 = vmax.f32 %v1430_v30, 0.0  ;;  %v2217_v33 = vadd.f32 %v2182_v13, %v3716_v11 }
 0x289   : > { %2261 = vrot.lane.b32.xlu1 %v2217_v33, %s3117_s30  ;;  %2764 = vmatmul.msk.f32.gmra.mxu0 %vm1149_vm2, %v1467_v32 }
 0x28c   : > { %v1432_v34 = vpop.f32.mrf.mxu3 }
 0x28d   : > { %v1433_v38 = vadd.f32 %v3771_v45, %v1432_v34 }
 0x28f   : > { %v1468_v40 = vmax.f32 %v1433_v38, 0.0 }
 0x290   : > { %v2186_v39 = vpop.permute.xlu2 %2185 }
 0x291   : > { %v2219_v42 = vadd.f32 %v2186_v39, %v3746_v62  ;;  %2765 = vmatmul.msk.f32.gmra.mxu0 %vm1149_vm2, %v1468_v40 }
 0x293   : > { %2265 = vrot.lane.b32.xlu0 %v2219_v42, %s3117_s30 }
 0x294   : > { %v1435_v21 = vpop.f32.mrf.mxu3 }
 0x295   : > { %v1436_v44 = vadd.f32 %v3771_v45, %v1435_v21 }
 0x297   : > { %v1469_v9 = vmax.f32 %v1436_v44, 0.0 }
 0x299   : > { %2766 = vmatmul.msk.f32.gmra.mxu0 %vm1149_vm2, %v1469_v9 }
 0x29c   : > { %v1438_v11 = vpop.f32.mrf.mxu3 }
 0x29d   : > { %v1439_v5 = vadd.f32 %v3771_v45, %v1438_v11  ;;  %v2184_v35 = vpop.permute.xlu1 %2183 }
 0x29e   : > { %v2218_v2 = vadd.f32 %v2184_v35, %v3724_v36 }
 0x29f   : > { %v1470_v37 = vmax.f32 %v1439_v5, 0.0 }
 0x2a0   : > { %2263 = vrot.lane.b32.xlu2 %v2218_v2, %s3117_s30 }
 0x2a1   : > { %2767 = vmatmul.msk.f32.gmra.mxu0 %vm1149_vm2, %v1470_v37 }
 0x2a4   : > { %v1441_v16 = vpop.f32.mrf.mxu3 }
 0x2a5   : > { %v1442_v62 = vadd.f32 %v3771_v45, %v1441_v16 }
 0x2a7   : > { %v1471_v53 = vmax.f32 %v1442_v62, 0.0 }
 0x2a9   : > { %2768 = vmatmul.msk.f32.gmra.mxu0 %vm1149_vm2, %v1471_v53 }
 0x2ac   : > { %v1444_v54 = vpop.f32.mrf.mxu3 }
 0x2ad   : > { %v1445_v56 = vadd.f32 %v3771_v45, %v1444_v54 }
 0x2af   : > { %v1472_v57 = vmax.f32 %v1445_v56, 0.0 }
 0x2b1   : > { %2769 = vmatmul.msk.f32.gmra.mxu0 %vm1149_vm2, %v1472_v57 }
 0x2b4   : > { %v1447_v58 = vpop.f32.mrf.mxu3 }
 0x2b5   : > { %v1448_v36 = vadd.f32 %v3771_v45, %v1447_v58 }
 0x2b7   : > { %v1473_v59 = vmax.f32 %v1448_v36, 0.0 }
 0x2b9   : > { %2770 = vmatmul.msk.f32.gmra.mxu0 %vm1149_vm2, %v1473_v59 }
 0x2bc   : > { %v1450_v63 = vpop.f32.mrf.mxu3 }
 0x2bd   : > { %v1451_v0 = vadd.f32 %v3771_v45, %v1450_v63 }
 0x2bf   : > { %v1474_v24 = vmax.f32 %v1451_v0, 0.0 }
 0x2c1   : > { %v2188_v27 = vpop.permute.xlu0 %2187  ;;  %2771 = vmatmul.msk.f32.gmra.mxu0 %vm1149_vm2, %v1474_v24 }
 0x2c2   : > { %v2220_v1 = vadd.f32 %v2188_v27, %v3761_v3 }
 0x2c4   : > { %2267 = vrot.lane.b32.xlu1 %v2220_v1, %s3117_s30  ;;  %v1453_v41 = vpop.f32.mrf.mxu3  ;;  %s3858_s30 = sand.u32 1, %s3096_s14  }
 0x2c5   : > { %v1454_v4 = vadd.f32 %v3771_v45, %v1453_v41  ;;  %s2686_s19 = sshll.u32 %s3858_s30, 7  ;;  %s2495_s11 = scalar_lea.sflag [#allocation6], %s3858_s30 }
 0x2c6   : > { %s3887_s20 = scalar_lea.vmem [#allocation5], %s2686_s19  ;;  %s3016_s19 = sshra.s32 %s2531_s28, 4  ;;  %s3017_s19 = int_to_ptr.hbm [resolvable:$true] %s3016_s19 }
 0x2c7   : > { %v1475_v50 = vmax.f32 %v1454_v4, 0.0  ;;  %s2528_s0 = sshll.u32 %s3887_s20, 4  ;;  %s3018_s1 = scalar_lea.hbm %s3017_s19, 128  ;;  %s2529_s0 = int_to_ptr.vmem [resolvable:$true] %s2528_s0 }
 0x2c8   : > { %p3019_p12 = scmp.ne.s32.totalorder %s3017_s19, %s3018_s1  ;;  %p3023_p1 = scmp.lt.s32.totalorder %s3017_s19, %s4343_s10 }
 0x2c9   : > { %2772 = vmatmul.msk.f32.gmra.mxu0 %vm1149_vm2, %v1475_v50 }
 0x2ca   : > { %p3020_p13 = pnand %p3019_p12, %p3217_p4 }
 0x2cc   : > { %v1456_v6 = vpop.f32.mrf.mxu3  ;;  %p3021_p0 = pneg %p3020_p13 }
 0x2cd   : > { %v1457_v10 = vadd.f32 %v3771_v45, %v1456_v6 }
 0x2cf   : > { %v1476_v48 = vmax.f32 %v1457_v10, 0.0 }
 0x2d1   : > { %2773 = vmatmul.msk.f32.gmra.mxu0 %vm1149_vm2, %v1476_v48 }
 0x2dc   : > { %v1459_v3 = vpop.f32.mrf.mxu3 }
 0x2dd   : > { %v1460_v17 = vadd.f32 %v3771_v45, %v1459_v3 }
 0x2de   : > { %v1549_v7 = vpop.f32.mrf.mxu0 }
 0x2df   : > { %v1477_v8 = vmax.f32 %v1460_v17, 0.0  ;;  %v1550_v55 = vadd.f32 %v3822_v52, %v1549_v7 }
 0x2e1   : > { %v1597_v43 = vmul.f32 0.17677669, %v1550_v55  ;;  %2774 = vmatmul.msk.f32.gmra.mxu0 %vm1149_vm2, %v1477_v8 }
 0x2e3   : > { %v1613_v12 = vsel %vm1149_vm2, %v1597_v43, -inf }
 0x2e4   : > { %v1614_v61 = vrot.slane %v1613_v12, 4 }
 0x2e6   : > { %v1615_v49 = vmax.f32 %v1613_v12, %v1614_v61  ;;  %v1552_v15 = vpop.f32.mrf.mxu0 }
 0x2e7   : > { %v1553_v18 = vadd.f32 %v3822_v52, %v1552_v15 }
 0x2e8   : > { %v1616_v60 = vrot.slane %v1615_v49, 2 }
 0x2e9   : > { %v1598_v14 = vmul.f32 0.17677669, %v1553_v18 }
 0x2ea   : > { %v1617_v19 = vmax.f32 %v1615_v49, %v1616_v60 }
 0x2eb   : > { %v1620_v22 = vsel %vm1149_vm2, %v1598_v14, -inf }
 0x2ec   : > { %v1618_v45 = vrot.slane %v1617_v19, 1  ;;  %v1621_v31 = vrot.slane %v1620_v22, 4 }
 0x2ee   : > { %v1619_v20 = vmax.f32 %v1617_v19, %v1618_v45  ;;  %v1622_v23 = vmax.f32 %v1620_v22, %v1621_v31  ;;  %v1555_v28 = vpop.f32.mrf.mxu0 }
 0x2ef   : > { %v1556_v25 = vadd.f32 %v3822_v52, %v1555_v28 }
 0x2f0   : > { %v1725_v26 = vsub.f32 %v1597_v43, %v1619_v20  ;;  %v1623_v51 = vrot.slane %v1622_v23, 2 }
 0x2f1   : > { %v1599_v47 = vmul.f32 0.17677669, %v1556_v25 }
 0x2f2   : > { %v1741_v29 = vmul.f32 1.442695, %v1725_v26  ;;  %v1624_v46 = vmax.f32 %v1622_v23, %v1623_v51 }
 0x2f3   : > { %v1627_v30 = vsel %vm1149_vm2, %v1599_v47, -inf }
 0x2f4   : > { %2938 = vpow2.f32 %v1741_v29  ;;  %v1625_v13 = vrot.slane %v1624_v46, 1  ;;  %v1628_v32 = vrot.slane %v1627_v30, 4 }
 0x2f6   : > { %v1626_v33 = vmax.f32 %v1624_v46, %v1625_v13  ;;  %v1629_v34 = vmax.f32 %v1627_v30, %v1628_v32  ;;  %v1558_v38 = vpop.f32.mrf.mxu0 }
 0x2f7   : > { %v1559_v40 = vadd.f32 %v3822_v52, %v1558_v38 }
 0x2f8   : > { %v1726_v39 = vsub.f32 %v1598_v14, %v1626_v33  ;;  %v1630_v42 = vrot.slane %v1629_v34, 2 }
 0x2f9   : > { %v1600_v21 = vmul.f32 0.17677669, %v1559_v40 }
 0x2fa   : > { %v3833_v44 = vpop.eup %2938  ;;  %v1743_v9 = vmul.f32 1.442695, %v1726_v39  ;;  %v1631_v11 = vmax.f32 %v1629_v34, %v1630_v42 }
 0x2fb   : > { %v1773_v5 = vsel %vm1149_vm2, %v3833_v44, 0.0  ;;  %v1634_v35 = vsel %vm1149_vm2, %v1600_v21, -inf }
 0x2fc   : > { %v1774_v2 = vrot.slane %v1773_v5, 4  ;;  %2940 = vpow2.f32 %v1743_v9  ;;  %v1632_v37 = vrot.slane %v1631_v11, 1  ;;  %v1635_v16 = vrot.slane %v1634_v35, 4 }
 0x2fe   : > { %v1775_v62 = vadd.f32 %v1774_v2, %v1773_v5  ;;  %v1633_v53 = vmax.f32 %v1631_v11, %v1632_v37  ;;  %v1636_v54 = vmax.f32 %v1634_v35, %v1635_v16  ;;  %v1561_v56 = vpop.f32.mrf.mxu0 }
 0x2ff   : > { %v1562_v57 = vadd.f32 %v3822_v52, %v1561_v56 }
 0x300   : > { %v1776_v58 = vrot.slane %v1775_v62, 2  ;;  %v1727_v36 = vsub.f32 %v1599_v47, %v1633_v53  ;;  %v1637_v59 = vrot.slane %v1636_v54, 2 }
 0x301   : > { %v1601_v63 = vmul.f32 0.17677669, %v1562_v57 }
 0x302   : > { %v3839_v0 = vpop.eup %2940  ;;  %v1777_v24 = vadd.f32 %v1776_v58, %v1775_v62  ;;  %v1745_v27 = vmul.f32 1.442695, %v1727_v36  ;;  %v1638_v1 = vmax.f32 %v1636_v54, %v1637_v59 }
 0x303   : > { %v1780_v41 = vsel %vm1149_vm2, %v3839_v0, 0.0  ;;  %v1641_v4 = vsel %vm1149_vm2, %v1601_v63, -inf }
 0x304   : > { %v1778_v50 = vrot.slane %v1777_v24, 1  ;;  %v1781_v6 = vrot.slane %v1780_v41, 4  ;;  %2942 = vpow2.f32 %v1745_v27  ;;  %v1639_v10 = vrot.slane %v1638_v1, 1 }
 0x305   : > { %v1642_v48 = vrot.slane %v1641_v4, 4 }
 0x306   : > { %v1779_v3 = vadd.f32 %v1778_v50, %v1777_v24  ;;  %v1782_v17 = vadd.f32 %v1781_v6, %v1780_v41  ;;  %v1640_v7 = vmax.f32 %v1638_v1, %v1639_v10  ;;  %v1564_v8 = vpop.f32.mrf.mxu0 }
 0x307   : > { %v1643_v55 = vmax.f32 %v1641_v4, %v1642_v48  ;;  %v1565_v43 = vadd.f32 %v3822_v52, %v1564_v8 }
 0x308   : > { %2944 = vrcp.f32 %v1779_v3  ;;  %v1783_v12 = vrot.slane %v1782_v17, 2  ;;  %v1728_v61 = vsub.f32 %v1600_v21, %v1640_v7  ;;  %v1894_v30 = vand.u32 2147483647, %v1779_v3 }
 0x309   : > { %v1644_v49 = vrot.slane %v1643_v55, 2  ;;  %v3845_v15 = vmul.f32 0.17677669, %v1565_v43  ;;  %v1896_v38 = vand.u32 2147483648, %v1779_v3  ;;  %vm1890_vm5 = vweird.f32 %v1779_v3 }
 0x30a   : > { %v3847_v18 = vpop.eup %2942  ;;  %v1784_v60 = vadd.f32 %v1783_v12, %v1782_v17  ;;  %v1747_v19 = vmul.f32 1.442695, %v1728_v61  ;;  %vm3864_vm7 = vcmp.eq.f32.partialorder %v1894_v30, 8.507059e+37 }
 0x30b   : > { %v1787_v14 = vsel %vm1149_vm2, %v3847_v18, 0.0  ;;  %v1645_v22 = vmax.f32 %v1643_v55, %v1644_v49  ;;  %v1648_v31 = vsel %vm1149_vm2, %v3845_v15, -inf  ;;  %v1897_v56 = vor.u32 1.1754944e-38, %v1896_v38 }
 0x30c   : > { %v1788_v45 = vrot.slane %v1787_v14, 4  ;;  %v1785_v20 = vrot.slane %v1784_v60, 1  ;;  %2946 = vpow2.f32 %v1747_v19  ;;  %v1649_v28 = vrot.slane %v1648_v31, 4 }
 0x30d   : > { %v1646_v23 = vrot.slane %v1645_v22, 1 }
 0x30e   : > { %v2945_v25 = vpop.eup %2944  ;;  %v1789_v26 = vadd.f32 %v1788_v45, %v1787_v14  ;;  %v1567_v51 = vpop.f32.mrf.mxu0  ;;  %v3853_v29 = vadd.f32 %v1785_v20, %v1784_v60  ;;  %v1650_v32 = vmax.f32 %v1648_v31, %v1649_v28 }
 0x30f   : > { %v1886_v47 = vmul.f32 %v2945_v25, %v1779_v3  ;;  %v1647_v46 = vmax.f32 %v1645_v22, %v1646_v23  ;;  %v1568_v33 = vadd.f32 %v3822_v52, %v1567_v51  ;;  %vm1891_vm6 = vweird.f32 %v2945_v25 }
 0x310   : > { %v1790_v13 = vrot.slane %v1789_v26, 2  ;;  %2948 = vrcp.f32 %v3853_v29  ;;  %v1651_v42 = vrot.slane %v1650_v32, 2  ;;  %vm1892_vm8 = vmor %vm1890_vm5, %vm1891_vm6  ;;  %v1909_v6 = vand.u32 2147483647, %v3853_v29 }
 0x311   : > { %v1887_v34 = vsub.f32 1.0, %v1886_v47  ;;  %v1729_v39 = vsub.f32 %v1601_v63, %v1647_v46  ;;  %v3862_v11 = vmul.f32 0.17677669, %v1568_v33  ;;  %v1911_v7 = vand.u32 2147483648, %v3853_v29 }
 0x312   : > { %v1791_v40 = vadd.f32 %v1790_v13, %v1789_v26  ;;  %v3860_v21 = vpop.eup %2946  ;;  %v1652_v53 = vmax.f32 %v1650_v32, %v1651_v42  ;;  %vm1905_vm10 = vweird.f32 %v3853_v29  ;;  %vm1910_vm11 = vcmp.eq.f32.partialorder %v1909_v6, 8.507059e+37 }
 0x313   : > { %v1888_v9 = vmul.f32 %v2945_v25, %v1887_v34  ;;  %v1794_v2 = vsel %vm1149_vm2, %v3860_v21, 0.0  ;;  %v1749_v37 = vmul.f32 1.442695, %v1729_v39  ;;  %v1655_v54 = vsel %vm1149_vm2, %v3862_v11, -inf }
 0x314   : > { %v1792_v35 = vrot.slane %v1791_v40, 1  ;;  %v1795_v62 = vrot.slane %v1794_v2, 4  ;;  %v1656_v58 = vrot.slane %v1655_v54, 4  ;;  %v1653_v27 = vrot.slane %v1652_v53, 1 }
 0x315   : > { %v1889_v16 = vadd.f32 %v2945_v25, %v1888_v9  ;;  %2950 = vpow2.f32 %v1749_v37  ;;  %v1912_v31 = vor.u32 1.1754944e-38, %v1911_v7 }
 0x316   : > { %v3873_v57 = vadd.f32 %v1792_v35, %v1791_v40  ;;  %v1570_v36 = vpop.f32.mrf.mxu0  ;;  %v2949_v59 = vpop.eup %2948  ;;  %v1796_v24 = vadd.f32 %v1795_v62, %v1794_v2  ;;  %v1654_v3 = vmax.f32 %v1652_v53, %v1653_v27  ;;  %v1657_v17 = vmax.f32 %v1655_v54, %v1656_v58 }
 0x317   : > { %v1893_v63 = vsel %vm1892_vm8, %v2945_v25, %v1889_v16  ;;  %v1571_v1 = vadd.f32 %v3822_v52, %v1570_v36  ;;  %v1901_v4 = vmul.f32 %v2949_v59, %v3853_v29  ;;  %vm1906_vm9 = vweird.f32 %v2949_v59 }
 0x318   : > { %v1898_v41 = vsel %vm3864_vm7, %v1897_v56, %v1893_v63  ;;  %2952 = vrcp.f32 %v3873_v57  ;;  %v1797_v48 = vrot.slane %v1796_v24, 2  ;;  %v1730_v12 = vsub.f32 %v3845_v15, %v1654_v3  ;;  %vm1907_vm12 = vmor %vm1905_vm10, %vm1906_vm9 }
 0x319   : > { %v3881_v50 = vmul.f32 %v3833_v44, %v1898_v41  ;;  %v1902_v10 = vsub.f32 1.0, %v1901_v4  ;;  %v3885_v8 = vmul.f32 0.17677669, %v1571_v1  ;;  %v1658_v61 = vrot.slane %v1657_v17, 2 }
 0x31a   : > { %v1798_v43 = vadd.f32 %v1797_v48, %v1796_v24  ;;  %v1751_v23 = vmul.f32 1.442695, %v1730_v12  ;;  %v1926_v13 = vand.u32 2147483648, %v3873_v57  ;;  %v1924_v33 = vand.u32 2147483647, %v3873_v57 }
 0x31b   : > { %2125 = vst.msk [vmem:[%s3887_s20] sm:$0xff] %vm1149_vm2, %v3881_v50  ;;  %v3892_v55 = vpop.eup %2950  ;;  %v1903_v44 = vmul.f32 %v2949_v59, %v1902_v10  ;;  %v1659_v28 = vmax.f32 %v1657_v17, %v1658_v61  ;;  %v1662_v51 = vsel %vm1149_vm2, %v3885_v8, -inf  ;;  %vm1920_vm14 = vweird.f32 %v3873_v57 }
 0x31c   : > { %v1801_v49 = vsel %vm1149_vm2, %v3892_v55, 0.0  ;;  %v1799_v19 = vrot.slane %v1798_v43, 1  ;;  %2954 = vpow2.f32 %v1751_v23  ;;  %v1663_v40 = vrot.slane %v1662_v51, 4 }
 0x31d   : > { %v1904_v14 = vadd.f32 %v2949_v59, %v1903_v44  ;;  %v1802_v22 = vrot.slane %v1801_v49, 4  ;;  %v1660_v46 = vrot.slane %v1659_v28, 1  ;;  %vm1925_vm1 = vcmp.eq.f32.partialorder %v1924_v33, 8.507059e+37 }
 0x31e   : > { %v2953_v60 = vpop.eup %2952  ;;  %v1573_v45 = vpop.f32.mrf.mxu0  ;;  %v1800_v25 = vadd.f32 %v1799_v19, %v1798_v43  ;;  %v1664_v5 = vmax.f32 %v1662_v51, %v1663_v40 }
 0x31f   : > { %v1916_v20 = vmul.f32 %v2953_v60, %v3873_v57  ;;  %v1908_v15 = vsel %vm1907_vm12, %v2949_v59, %v1904_v14  ;;  %v1803_v26 = vadd.f32 %v1802_v22, %v1801_v49  ;;  %vm1921_vm13 = vweird.f32 %v2953_v60  ;;  %v2238_v22 = vpop.permute.xlu1 %2237 }
 0x320   : > { %v1913_v47 = vsel %vm1910_vm11, %v1912_v31, %v1908_v15  ;;  %2956 = vrcp.f32 %v1800_v25  ;;  %v1661_v38 = vmax.f32 %v1659_v28, %v1660_v46  ;;  %vm1922_vm15 = vmor %vm1920_vm14, %vm1921_vm13  ;;  %v1574_v62 = vadd.f32 %v3822_v52, %v1573_v45 }
 0x321   : > { %v1917_v29 = vsub.f32 1.0, %v1916_v20  ;;  %v3903_v30 = vmul.f32 %v3839_v0, %v1913_v47  ;;  %v1804_v34 = vrot.slane %v1803_v26, 2  ;;  %v1927_v0 = vor.u32 1.1754944e-38, %v1926_v13 }
 0x322   : > { %v1731_v9 = vsub.f32 %v3862_v11, %v1661_v38  ;;  %v3912_v2 = vpop.eup %2954  ;;  %v1665_v63 = vrot.slane %v1664_v5, 2  ;;  %v3922_v27 = vmul.f32 0.17677669, %v1574_v62  ;;  %v1939_v1 = vand.u32 2147483647, %v1800_v25 }
 0x323   : > { %v1918_v32 = vmul.f32 %v2953_v60, %v1917_v29  ;;  %2126 = vst.msk [vmem:[%s3887_s20 + $0x8] sm:$0xff] %vm1149_vm2, %v3903_v30  ;;  %v1805_v42 = vadd.f32 %v1804_v34, %v1803_v26  ;;  %v1808_v56 = vsel %vm1149_vm2, %v3912_v2, 0.0  ;;  %v1941_v41 = vand.u32 2147483648, %v1800_v25 }
 0x324   : > { %v1753_v57 = vmul.f32 1.442695, %v1731_v9  ;;  %v1809_v59 = vrot.slane %v1808_v56, 4  ;;  %v1666_v6 = vmax.f32 %v1664_v5, %v1665_v63  ;;  %vm1935_vm4 = vweird.f32 %v1800_v25 }
 0x325   : > { %v1919_v39 = vadd.f32 %v2953_v60, %v1918_v32  ;;  %v1806_v16 = vrot.slane %v1805_v42, 1  ;;  %v1669_v17 = vsel %vm1149_vm2, %v3922_v27, -inf  ;;  %vm1940_vm6 = vcmp.eq.f32.partialorder %v1939_v1, 8.507059e+37 }
 0x326   : > { %v1576_v35 = vpop.f32.mrf.mxu0  ;;  %v2957_v53 = vpop.eup %2956  ;;  %2958 = vpow2.f32 %v1753_v57  ;;  %v1942_v44 = vor.u32 1.1754944e-38, %v1941_v41  ;;  %v1667_v43 = vrot.slane %v1666_v6, 1  ;;  %v1670_v12 = vrot.slane %v1669_v17, 4 }
 0x327   : > { %v1923_v37 = vsel %vm1922_vm15, %v2953_v60, %v1919_v39  ;;  %v1931_v11 = vmul.f32 %v2957_v53, %v1800_v25  ;;  %v3920_v36 = vadd.f32 %v1806_v16, %v1805_v42  ;;  %vm1936_vm3 = vweird.f32 %v2957_v53  ;;  %v2240_v16 = vpop.permute.xlu2 %2239 }
 0x328   : > { %v1928_v54 = vsel %vm1925_vm1, %v1927_v0, %v1923_v37  ;;  %vm1937_vm5 = vmor %vm1935_vm4, %vm1936_vm3  ;;  %v1577_v14 = vadd.f32 %v3822_v52, %v1576_v35  ;;  %v1668_v20 = vmax.f32 %v1666_v6, %v1667_v43  ;;  %v2285_v23 = vmul.f32 %v2238_v22, %v3881_v50 }
 0x329   : > { %v3918_v58 = vmul.f32 %v3847_v18, %v1928_v54  ;;  %v1932_v24 = vsub.f32 1.0, %v1931_v11  ;;  %2960 = vrcp.f32 %v3920_v36  ;;  %v1810_v18 = vadd.f32 %v1809_v59, %v1808_v56 }
 0x32a   : > { %v1732_v51 = vsub.f32 %v3885_v8, %v1668_v20  ;;  %v1671_v47 = vmax.f32 %v1669_v17, %v1670_v12  ;;  %v1954_v46 = vand.u32 2147483647, %v3920_v36  ;;  %v3944_v32 = vmul.f32 0.17677669, %v1577_v14 }
 0x32b   : > { %2127 = vst.msk [vmem:[%s3887_s20 + $0x10] sm:$0xff] %vm1149_vm2, %v3918_v58  ;;  %v1933_v4 = vmul.f32 %v2957_v53, %v1932_v24  ;;  %v1811_v3 = vrot.slane %v1810_v18, 2  ;;  %v2301_v40 = vsel %vm1149_vm2, %v2285_v23, 0.0  ;;  %vm1950_vm8 = vweird.f32 %v3920_v36 }
 0x32c   : > { %v3930_v7 = vpop.eup %2958  ;;  %v1755_v33 = vmul.f32 1.442695, %v1732_v51  ;;  %v1672_v34 = vrot.slane %v1671_v47, 2  ;;  %v1676_v9 = vsel %vm1149_vm2, %v3944_v32, -inf  ;;  %v2302_v5 = vrot.slane %v2301_v40, 4 }
 0x32d   : > { %v1934_v48 = vadd.f32 %v2957_v53, %v1933_v4  ;;  %v1812_v49 = vadd.f32 %v1811_v3, %v1810_v18  ;;  %v1815_v60 = vsel %vm1149_vm2, %v3930_v7, 0.0  ;;  %vm1955_vm10 = vcmp.eq.f32.partialorder %v1954_v46, 8.507059e+37 }
 0x32e   : > { %v1579_v10 = vpop.f32.mrf.mxu0  ;;  %v1816_v31 = vrot.slane %v1815_v60, 4  ;;  %v1673_v0 = vmax.f32 %v1671_v47, %v1672_v34  ;;  %v1677_v54 = vrot.slane %v1676_v9, 4  ;;  %v2286_v57 = vmul.f32 %v2240_v16, %v3903_v30 }
 0x32f   : > { %v1938_v61 = vsel %vm1937_vm5, %v2957_v53, %v1934_v48  ;;  %v2961_v19 = vpop.eup %2960  ;;  %v1813_v25 = vrot.slane %v1812_v49, 1  ;;  %v1580_v56 = vadd.f32 %v3822_v52, %v1579_v10  ;;  %v3967_v30 = vadd.f32 %v2302_v5, %v2301_v40 }
 0x330   : > { %v1943_v45 = vsel %vm1940_vm6, %v1942_v44, %v1938_v61  ;;  %v1946_v15 = vmul.f32 %v2961_v19, %v3920_v36  ;;  %v1817_v26 = vadd.f32 %v1816_v31, %v1815_v60  ;;  %vm1951_vm7 = vweird.f32 %v2961_v19 }
 0x331   : > { %v3937_v28 = vmul.f32 %v3860_v21, %v1943_v45  ;;  %v3942_v13 = vadd.f32 %v1813_v25, %v1812_v49  ;;  %v1956_v21 = vand.u32 2147483648, %v3920_v36  ;;  %vm1952_vm9 = vmor %vm1950_vm8, %vm1951_vm7  ;;  %v1674_v53 = vrot.slane %v1673_v0, 1 }
 0x332   : > { %v1947_v29 = vsub.f32 1.0, %v1946_v15  ;;  %v1818_v50 = vrot.slane %v1817_v26, 2  ;;  %v1678_v41 = vmax.f32 %v1676_v9, %v1677_v54  ;;  %v3970_v48 = vmul.f32 0.17677669, %v1580_v56 }
 0x333   : > { %2128 = vst.msk [vmem:[%s3887_s20 + $0x18] sm:$0xff] %vm1149_vm2, %v3937_v28  ;;  %2962 = vrcp.f32 %v3942_v13  ;;  %v1957_v35 = vor.u32 1.1754944e-38, %v1956_v21  ;;  %v1969_v24 = vand.u32 2147483647, %v3942_v13  ;;  %v1675_v1 = vmax.f32 %v1673_v0, %v1674_v53 }
 0x334   : > { %v1948_v8 = vmul.f32 %v2961_v19, %v1947_v29  ;;  %v1819_v39 = vadd.f32 %v1818_v50, %v1817_v26  ;;  %2964 = vpow2.f32 %v1755_v33  ;;  %v1971_v10 = vand.u32 2147483648, %v3942_v13 }
 0x335   : > { %v1733_v44 = vsub.f32 %v3922_v27, %v1675_v1  ;;  %v1679_v43 = vrot.slane %v1678_v41, 2  ;;  %v3980_v12 = vsel %vm1149_vm2, %v2286_v57, 0.0  ;;  %vm1965_vm11 = vweird.f32 %v3942_v13 }
 0x336   : > { %v1582_v38 = vpop.f32.mrf.mxu0  ;;  %v1949_v42 = vadd.f32 %v2961_v19, %v1948_v8  ;;  %v1820_v37 = vrot.slane %v1819_v39, 1  ;;  %vm3983_vm12 = vcmp.eq.f32.partialorder %v1969_v24, 8.507059e+37  ;;  %v1972_v22 = vor.u32 1.1754944e-38, %v1971_v10 }
 0x337   : > { %v1757_v14 = vmul.f32 1.442695, %v1733_v44  ;;  %v1683_v27 = vsel %vm1149_vm2, %v3970_v48, -inf }
 0x338   : > { %v1953_v62 = vsel %vm1952_vm9, %v2961_v19, %v1949_v42  ;;  %v3957_v36 = vadd.f32 %v1820_v37, %v1819_v39  ;;  %v1680_v19 = vmax.f32 %v1678_v41, %v1679_v43  ;;  %v1684_v47 = vrot.slane %v1683_v27, 4 }
 0x339   : > { %v1958_v11 = vsel %vm1955_vm10, %v1957_v35, %v1953_v62  ;;  %v2963_v59 = vpop.eup %2962  ;;  %v2309_v62 = vrot.slane %v3980_v12, 4 }
 0x33a   : > { %v3960_v63 = vmul.f32 %v3892_v55, %v1958_v11  ;;  %v1961_v4 = vmul.f32 %v2963_v59, %v3942_v13  ;;  %2966 = vrcp.f32 %v3957_v36  ;;  %v3965_v6 = vpop.eup %2964  ;;  %v1583_v55 = vadd.f32 %v3822_v52, %v1582_v38 }
 0x33b   : > { %v1822_v17 = vsel %vm1149_vm2, %v3965_v6, 0.0  ;;  %vm1966_vm13 = vweird.f32 %v2963_v59  ;;  %v1984_v15 = vand.u32 2147483647, %v3957_v36  ;;  %2968 = vpow2.f32 %v1757_v14 }
 0x33c   : > { %2129 = vst.msk [vmem:[%s3887_s20 + $0x20] sm:$0xff] %vm1149_vm2, %v3960_v63  ;;  %v1962_v3 = vsub.f32 1.0, %v1961_v4  ;;  %v1823_v49 = vrot.slane %v1822_v17, 4  ;;  %v3989_v31 = vmul.f32 0.17677669, %v1583_v55  ;;  %v1681_v25 = vrot.slane %v1680_v19, 1  ;;  %vm1967_vm14 = vmor %vm1965_vm11, %vm1966_vm13 }
 0x33d   : > { %v1986_v21 = vand.u32 2147483648, %v3957_v36  ;;  %v1685_v8 = vmax.f32 %v1683_v27, %v1684_v47  ;;  %vm1980_vm1 = vweird.f32 %v3957_v36  ;;  %vm1985_vm4 = vcmp.eq.f32.partialorder %v1984_v15, 8.507059e+37  ;;  %v2242_v15 = vpop.permute.xlu0 %2241 }
 0x33e   : > { %v1585_v18 = vpop.f32.mrf.mxu0  ;;  %v1963_v60 = vmul.f32 %v2963_v59, %v1962_v3  ;;  %v1824_v45 = vadd.f32 %v1823_v49, %v1822_v17  ;;  %v1682_v50 = vmax.f32 %v1680_v19, %v1681_v25  ;;  %v1690_v33 = vsel %vm1149_vm2, %v3989_v31, -inf }
 0x33f   : > { %v1586_v29 = vadd.f32 %v3822_v52, %v1585_v18  ;;  %v1691_v0 = vrot.slane %v1690_v33, 4  ;;  %v1686_v35 = vrot.slane %v1685_v8, 2  ;;  %v1987_v11 = vor.u32 1.1754944e-38, %v1986_v21 }
 0x340   : > { %v2967_v20 = vpop.eup %2966  ;;  %v1964_v23 = vadd.f32 %v2963_v59, %v1963_v60  ;;  %v1825_v51 = vrot.slane %v1824_v45, 2  ;;  %v1734_v42 = vsub.f32 %v3944_v32, %v1682_v50  ;;  %v4027_v55 = vadd.f32 %v2309_v62, %v3980_v12 }
 0x341   : > { %v1976_v26 = vmul.f32 %v2967_v20, %v3957_v36  ;;  %vm1981_vm15 = vweird.f32 %v2967_v20  ;;  %v4005_v37 = vmul.f32 0.17677669, %v1586_v29  ;;  %v4007_v16 = vpop.eup %2968  ;;  %v1692_v54 = vmax.f32 %v1690_v33, %v1691_v0  ;;  %v2416_v36 = vld [vmem:[%s4340_s7 + $0x18] sm:$0xff] }
 0x342   : > { %v1968_v46 = vsel %vm1967_vm14, %v2963_v59, %v1964_v23  ;;  %v1826_v13 = vadd.f32 %v1825_v51, %v1824_v45  ;;  %v1759_v53 = vmul.f32 1.442695, %v1734_v42  ;;  %v1829_v32 = vsel %vm1149_vm2, %v4007_v16, 0.0  ;;  %vm1982_vm3 = vmor %vm1980_vm1, %vm1981_vm15  ;;  %2474 = vmatpush.msrb.mxu1 %v2416_v36 }
 0x343   : > { %v1973_v38 = vsel %vm3983_vm12, %v1972_v22, %v1968_v46  ;;  %v1977_v40 = vsub.f32 1.0, %v1976_v26  ;;  %v1687_v57 = vmax.f32 %v1685_v8, %v1686_v35  ;;  %v1830_v59 = vrot.slane %v1829_v32, 4 }
 0x344   : > { %v4002_v39 = vmul.f32 %v3912_v2, %v1973_v38  ;;  %v1827_v5 = vrot.slane %v1826_v13, 1  ;;  %2970 = vpow2.f32 %v1759_v53  ;;  %v1693_v24 = vrot.slane %v1692_v54, 2 }
 0x345   : > { %v1978_v9 = vmul.f32 %v2967_v20, %v1977_v40  ;;  %v1697_v41 = vsel %vm1149_vm2, %v4005_v37, -inf  ;;  %v1831_v18 = vadd.f32 %v1830_v59, %v1829_v32  ;;  %v1688_v17 = vrot.slane %v1687_v57, 1 }
 0x346   : > { %v1588_v34 = vpop.f32.mrf.mxu0  ;;  %2130 = vst.msk [vmem:[%s3887_s20 + $0x28] sm:$0xff] %vm1149_vm2, %v4002_v39  ;;  %v4014_v56 = vadd.f32 %v1827_v5, %v1826_v13  ;;  %v1694_v44 = vmax.f32 %v1692_v54, %v1693_v24  ;;  %v1698_v49 = vrot.slane %v1697_v41, 4  ;;  %v2304_v60 = vrot.slane %v3967_v30, 2  ;;  %v2414_v13 = vld [vmem:[%s4340_s7 + $0x8] sm:$0xff] }
 0x347   : > { %v1979_v2 = vadd.f32 %v2967_v20, %v1978_v9  ;;  %v1589_v10 = vadd.f32 %v3822_v52, %v1588_v34  ;;  %v1832_v61 = vrot.slane %v1831_v18, 2  ;;  %v1689_v14 = vmax.f32 %v1687_v57, %v1688_v17 }
 0x348   : > { %2972 = vrcp.f32 %v4014_v56  ;;  %v1695_v19 = vrot.slane %v1694_v44, 1  ;;  %v1699_v12 = vmax.f32 %v1697_v41, %v1698_v49  ;;  %v2311_v25 = vrot.slane %v4027_v55, 2 }
 0x349   : > { %v1983_v1 = vsel %vm1982_vm3, %v2967_v20, %v1979_v2  ;;  %v1833_v45 = vadd.f32 %v1832_v61, %v1831_v18  ;;  %v4038_v27 = vmul.f32 0.17677669, %v1589_v10  ;;  %v1735_v51 = vsub.f32 %v3970_v48, %v1689_v14 }
 0x34a   : > { %v1988_v4 = vsel %vm1985_vm4, %v1987_v11, %v1983_v1  ;;  %v4036_v22 = vpop.eup %2970  ;;  %v1696_v47 = vmax.f32 %v1694_v44, %v1695_v19  ;;  %v2287_v29 = vmul.f32 %v2242_v15, %v3918_v58  ;;  %v2001_v21 = vand.u32 2147483648, %v4014_v56 }
 0x34b   : > { %v4030_v3 = vmul.f32 %v3930_v7, %v1988_v4  ;;  %v2415_v7 = vld [vmem:[%s4340_s7 + $0x10] sm:$0xff]  ;;  %v1836_v26 = vsel %vm1149_vm2, %v4036_v22, 0.0  ;;  %v1834_v50 = vrot.slane %v1833_v45, 1  ;;  %v1761_v34 = vmul.f32 1.442695, %v1735_v51 }
 0x34c   : > { %2475 = vmatpush.msrb.mxu1 %v2415_v7  ;;  %v1837_v33 = vrot.slane %v1836_v26, 4  ;;  %v1736_v38 = vsub.f32 %v3989_v31, %v1696_v47  ;;  %v1700_v40 = vrot.slane %v1699_v12, 2  ;;  %v1704_v58 = vsel %vm1149_vm2, %v4038_v27, -inf  ;;  %v2413_v31 = vld [vmem:[%s4340_s7] sm:$0xff] }
 0x34d   : > { %2131 = vst.msk [vmem:[%s3887_s20 + $0x30] sm:$0xff] %vm1149_vm2, %v4030_v3  ;;  %v4055_v48 = vadd.f32 %v1834_v50, %v1833_v45  ;;  %2974 = vpow2.f32 %v1761_v34  ;;  %v1999_v62 = vand.u32 2147483647, %v4014_v56  ;;  %v4067_v53 = vsel %vm1149_vm2, %v2287_v29, 0.0  ;;  %v2244_v45 = vpop.permute.xlu1 %2243 }
 0x34e   : > { %v1591_v43 = vpop.f32.mrf.mxu0  ;;  %v2973_v23 = vpop.eup %2972  ;;  %2476 = vmatpush.msrb.mxu1 %v2414_v13  ;;  %v1838_v0 = vadd.f32 %v1837_v33, %v1836_v26  ;;  %v1763_v9 = vmul.f32 1.442695, %v1736_v38  ;;  %v1701_v5 = vmax.f32 %v1699_v12, %v1700_v40  ;;  %vm1995_vm6 = vweird.f32 %v4014_v56 }
 0x34f   : > { %v1592_v20 = vadd.f32 %v3822_v52, %v1591_v43  ;;  %v1991_v46 = vmul.f32 %v2973_v23, %v4014_v56  ;;  %vm1996_vm5 = vweird.f32 %v2973_v23  ;;  %2976 = vrcp.f32 %v4055_v48 }
 0x350   : > { %2477 = vmatpush.msrb.mxu1 %v2413_v31  ;;  %v1839_v54 = vrot.slane %v1838_v0, 2  ;;  %2978 = vpow2.f32 %v1763_v9  ;;  %v1702_v2 = vrot.slane %v1701_v5, 1  ;;  %v1705_v57 = vrot.slane %v1704_v58, 4  ;;  %vm1997_vm7 = vmor %vm1995_vm6, %vm1996_vm5 }
 0x351   : > { %v1992_v8 = vsub.f32 1.0, %v1991_v46  ;;  %v4059_v42 = vmul.f32 0.17677669, %v1592_v20  ;;  %v2002_v59 = vor.u32 1.1754944e-38, %v2001_v21  ;;  %v4073_v41 = vadd.f32 %v2304_v60, %v3967_v30  ;;  %v2246_v20 = vpop.permute.xlu2 %2245 }
 0x352   : > { %v1840_v24 = vadd.f32 %v1839_v54, %v1838_v0  ;;  %v1703_v1 = vmax.f32 %v1701_v5, %v1702_v2  ;;  %vm2000_vm8 = vcmp.eq.f32.partialorder %v1999_v62, 8.507059e+37  ;;  %v1706_v18 = vmax.f32 %v1704_v58, %v1705_v57 }
 0x353   : > { %v1993_v35 = vmul.f32 %v2973_v23, %v1992_v8  ;;  %v1711_v11 = vsel %vm1149_vm2, %v4059_v42, -inf  ;;  %v4075_v10 = vpop.eup %2974  ;;  %v4078_v17 = vadd.f32 %v2311_v25, %v4027_v55  ;;  %v2316_v49 = vrot.slane %v4067_v53, 4 }
 0x354   : > { %v1712_v36 = vrot.slane %v1711_v11, 4  ;;  %v1841_v44 = vrot.slane %v1840_v24, 1  ;;  %v1737_v43 = vsub.f32 %v4005_v37, %v1703_v1  ;;  %v1843_v30 = vsel %vm1149_vm2, %v4075_v10, 0.0 }
 0x355   : > { %v1994_v32 = vadd.f32 %v2973_v23, %v1993_v35  ;;  %v2977_v61 = vpop.eup %2976  ;;  %v1707_v60 = vrot.slane %v1706_v18, 2  ;;  %v1844_v7 = vrot.slane %v1843_v30, 4  ;;  %v2289_v26 = vmul.f32 %v2246_v20, %v3960_v63  ;;  %v2248_v20 = vpop.permute.xlu0 %2247 }
 0x356   : > { %v4087_v19 = vpop.eup %2978  ;;  %v2006_v55 = vmul.f32 %v2977_v61, %v4055_v48  ;;  %v4090_v12 = vadd.f32 %v1841_v44, %v1840_v24  ;;  %v1713_v37 = vmax.f32 %v1711_v11, %v1712_v36  ;;  %v1765_v15 = vmul.f32 1.442695, %v1737_v43 }
 0x357   : > { %v1998_v4 = vsel %vm1997_vm7, %v2973_v23, %v1994_v32  ;;  %v2288_v23 = vmul.f32 %v2244_v45, %v3937_v28  ;;  %v1708_v25 = vmax.f32 %v1706_v18, %v1707_v60  ;;  %v2014_v47 = vand.u32 2147483647, %v4055_v48 }
 0x358   : > { %v2003_v56 = vsel %vm2000_vm8, %v2002_v59, %v1998_v4  ;;  %v2007_v51 = vsub.f32 1.0, %v2006_v55  ;;  %2980 = vrcp.f32 %v4090_v12  ;;  %v2016_v46 = vand.u32 2147483648, %v4055_v48 }
 0x359   : > { %v4083_v14 = vmul.f32 %v3965_v6, %v2003_v56  ;;  %v1850_v6 = vsel %vm1149_vm2, %v4087_v19, 0.0  ;;  %v1845_v21 = vadd.f32 %v1844_v7, %v1843_v30  ;;  %2982 = vpow2.f32 %v1765_v15 }
 0x35a   : > { %v1851_v28 = vrot.slane %v1850_v6, 4  ;;  %v2008_v50 = vmul.f32 %v2977_v61, %v2007_v51  ;;  %vm2011_vm9 = vweird.f32 %v2977_v61  ;;  %v1709_v33 = vrot.slane %v1708_v25, 1 }
 0x35b   : > { %2132 = vst.msk [vmem:[%s3887_s20 + $0x38] sm:$0xff] %vm1149_vm2, %v4083_v14  ;;  %v1714_v34 = vrot.slane %v1713_v37, 2  ;;  %v2322_v38 = vsel %vm1149_vm2, %v2288_v23, 0.0  ;;  %v1846_v40 = vrot.slane %v1845_v21, 2  ;;  %vm2010_vm10 = vweird.f32 %v4055_v48 }
 0x35c   : > { %v1852_v13 = vadd.f32 %v1851_v28, %v1850_v6  ;;  %v2009_v8 = vadd.f32 %v2977_v61, %v2008_v50  ;;  %v1710_v58 = vmax.f32 %v1708_v25, %v1709_v33  ;;  %v2329_v9 = vsel %vm1149_vm2, %v2289_v26, 0.0  ;;  %vm2012_vm11 = vmor %vm2010_vm10, %vm2011_vm9 }
 0x35d   : > { %v1715_v0 = vmax.f32 %v1713_v37, %v1714_v34  ;;  %v2017_v5 = vor.u32 1.1754944e-38, %v2016_v46  ;;  %v1847_v31 = vadd.f32 %v1846_v40, %v1845_v21  ;;  %vm2015_vm12 = vcmp.eq.f32.partialorder %v2014_v47, 8.507059e+37  ;;  %v2250_v40 = vpop.permute.xlu1 %2249 }
 0x35e   : > { %v1594_v29 = vpop.f32.mrf.mxu0  ;;  %v1853_v35 = vrot.slane %v1852_v13, 2  ;;  %v2981_v62 = vpop.eup %2980  ;;  %v2013_v54 = vsel %vm2012_vm11, %v2977_v61, %v2009_v8  ;;  %v1738_v2 = vsub.f32 %v4038_v27, %v1710_v58  ;;  %v2317_v43 = vadd.f32 %v2316_v49, %v4067_v53 }
 0x35f   : > { %v1595_v63 = vadd.f32 %v3822_v52, %v1594_v29  ;;  %v1716_v32 = vrot.slane %v1715_v0, 1  ;;  %v4107_v57 = vpop.eup %2982  ;;  %v2018_v52 = vsel %vm2015_vm12, %v2017_v5, %v2013_v54  ;;  %v2021_v48 = vmul.f32 %v2981_v62, %v4090_v12 }
 0x360   : > { %v1848_v11 = vrot.slane %v1847_v31, 1  ;;  %v4113_v24 = vmul.f32 %v4007_v16, %v2018_v52  ;;  %v1854_v1 = vadd.f32 %v1853_v35, %v1852_v13  ;;  %v1857_v36 = vsel %vm1149_vm2, %v4107_v57, 0.0 }
 0x361   : > { %v4110_v59 = vmul.f32 0.17677669, %v1595_v63  ;;  %v1767_v4 = vmul.f32 1.442695, %v1738_v2  ;;  %v2022_v18 = vsub.f32 1.0, %v2021_v48  ;;  %v1858_v56 = vrot.slane %v1857_v36, 4 }
 0x362   : > { %v4117_v27 = vadd.f32 %v1848_v11, %v1847_v31  ;;  %v1717_v44 = vmax.f32 %v1715_v0, %v1716_v32  ;;  %v2031_v61 = vand.u32 2147483648, %v4090_v12  ;;  %v1855_v30 = vrot.slane %v1854_v1, 1  ;;  %2133 = vst.msk [vmem:[%s3887_s20 + $0x40] sm:$0xff] %vm1149_vm2, %v4113_v24 }
 0x363   : > { %2984 = vpow2.f32 %v1767_v4  ;;  %v2023_v16 = vmul.f32 %v2981_v62, %v2022_v18  ;;  %vm2026_vm13 = vweird.f32 %v2981_v62  ;;  %v2029_v60 = vand.u32 2147483647, %v4090_v12 }
 0x364   : > { %2986 = vrcp.f32 %v4117_v27  ;;  %v2323_v45 = vrot.slane %v2322_v38, 4  ;;  %v2330_v55 = vrot.slane %v2329_v9, 4  ;;  %v4126_v7 = vadd.f32 %v1855_v30, %v1854_v1 }
 0x365   : > { %v1859_v37 = vadd.f32 %v1858_v56, %v1857_v36  ;;  %v2024_v53 = vadd.f32 %v2981_v62, %v2023_v16  ;;  %vm2025_vm14 = vweird.f32 %v4090_v12  ;;  %v1739_v49 = vsub.f32 %v4059_v42, %v1717_v44 }
 0x366   : > { %v1718_v23 = vsel %vm1149_vm2, %v4110_v59, -inf  ;;  %v2306_v6 = vrot.slane %v4073_v41, 1  ;;  %v2290_v15 = vmul.f32 %v2248_v20, %v4002_v39  ;;  %vm2027_vm15 = vmor %vm2025_vm14, %vm2026_vm13  ;;  %v2032_v25 = vor.u32 1.1754944e-38, %v2031_v61 }
 0x367   : > { %2988 = vrcp.f32 %v4126_v7  ;;  %v2318_v26 = vrot.slane %v2317_v43, 2  ;;  %v2028_v51 = vsel %vm2027_vm15, %v2981_v62, %v2024_v53  ;;  %vm2030_vm1 = vcmp.eq.f32.partialorder %v2029_v60, 8.507059e+37 }
 0x368   : > { %v1860_v47 = vrot.slane %v1859_v37, 2  ;;  %v4137_v12 = vadd.f32 %v2323_v45, %v2322_v38  ;;  %v2033_v42 = vsel %vm2030_vm1, %v2032_v25, %v2028_v51  ;;  %v1769_v46 = vmul.f32 1.442695, %v1739_v49 }
 0x369   : > { %v4135_v29 = vpop.eup %2984  ;;  %v1719_v21 = vrot.slane %v1718_v23, 4  ;;  %v2313_v50 = vrot.slane %v4078_v17, 1  ;;  %v4140_v39 = vadd.f32 %v2330_v55, %v2329_v9  ;;  %v4143_v33 = vmul.f32 %v4036_v22, %v2033_v42 }
 0x36a   : > { %v2987_v28 = vpop.eup %2986  ;;  %v1861_v34 = vadd.f32 %v1860_v47, %v1859_v37  ;;  %v2336_v13 = vsel %vm1149_vm2, %v2290_v15, 0.0  ;;  %v1864_v38 = vsel %vm1149_vm2, %v4135_v29, 0.0  ;;  %2990 = vpow2.f32 %v1769_v46 }
 0x36b   : > { %v2036_v63 = vmul.f32 %v2987_v28, %v4117_v27  ;;  %v4149_v8 = vadd.f32 %v2318_v26, %v2317_v43  ;;  %v2291_v58 = vmul.f32 %v2250_v40, %v4030_v3  ;;  %v1865_v9 = vrot.slane %v1864_v38, 4  ;;  %2134 = vst.msk [vmem:[%s3887_s20 + $0x48] sm:$0xff] %vm1149_vm2, %v4143_v33 }
 0x36c   : > { %v1862_v0 = vrot.slane %v1861_v34, 1  ;;  %v2325_v5 = vrot.slane %v4137_v12, 2  ;;  %v2046_v35 = vand.u32 2147483648, %v4117_v27  ;;  %v1720_v62 = vmax.f32 %v1718_v23, %v1719_v21 }
 0x36d   : > { %v2989_v22 = vpop.eup %2988  ;;  %v2037_v31 = vsub.f32 1.0, %v2036_v63  ;;  %v2332_v54 = vrot.slane %v4140_v39, 2  ;;  %v2337_v2 = vrot.slane %v2336_v13, 4  ;;  %v2044_v32 = vand.u32 2147483647, %v4117_v27 }
 0x36e   : > { %v2051_v52 = vmul.f32 %v2989_v22, %v4126_v7  ;;  %vm2041_vm3 = vweird.f32 %v2987_v28  ;;  %v4160_v48 = vadd.f32 %v1862_v0, %v1861_v34  ;;  %v1866_v11 = vadd.f32 %v1865_v9, %v1864_v38  ;;  %v2252_v38 = vpop.permute.xlu2 %2251 }
 0x36f   : > { %v2038_v3 = vmul.f32 %v2987_v28, %v2037_v31  ;;  %v2343_v1 = vsel %vm1149_vm2, %v2291_v58, 0.0  ;;  %vm2040_vm4 = vweird.f32 %v4117_v27  ;;  %v1721_v4 = vrot.slane %v1720_v62, 2 }
 0x370   : > { %v2052_v36 = vsub.f32 1.0, %v2051_v52  ;;  %v4164_v18 = vpop.eup %2990  ;;  %v2047_v44 = vor.u32 1.1754944e-38, %v2046_v35  ;;  %v2061_v43 = vand.u32 2147483648, %v4126_v7  ;;  %2992 = vrcp.f32 %v4160_v48  ;;  %vm2042_vm5 = vmor %vm2040_vm4, %vm2041_vm3 }
 0x371   : > { %v2039_v56 = vadd.f32 %v2987_v28, %v2038_v3  ;;  %vm2056_vm6 = vweird.f32 %v2989_v22  ;;  %v2059_v30 = vand.u32 2147483647, %v4126_v7  ;;  %v1867_v16 = vrot.slane %v1866_v11, 2 }
 0x372   : > { %v2053_v61 = vmul.f32 %v2989_v22, %v2052_v36  ;;  %vm2045_vm7 = vcmp.eq.f32.partialorder %v2044_v32, 8.507059e+37  ;;  %v1871_v27 = vsel %vm1149_vm2, %v4164_v18, 0.0  ;;  %v1722_v45 = vmax.f32 %v1720_v62, %v1721_v4 }
 0x373   : > { %v2043_v60 = vsel %vm2042_vm5, %v2987_v28, %v2039_v56  ;;  %v2344_v55 = vrot.slane %v2343_v1, 4  ;;  %vm2055_vm8 = vweird.f32 %v4126_v7  ;;  %v2062_v49 = vor.u32 1.1754944e-38, %v2061_v43 }
 0x374   : > { %v2048_v37 = vsel %vm2045_vm7, %v2047_v44, %v2043_v60  ;;  %v2054_v20 = vadd.f32 %v2989_v22, %v2053_v61  ;;  %vm2057_vm9 = vmor %vm2055_vm8, %vm2056_vm6  ;;  %v1868_v23 = vadd.f32 %v1867_v16, %v1866_v11  ;;  %v1872_v15 = vrot.slane %v1871_v27, 4 }
 0x375   : > { %v4173_v53 = vmul.f32 %v4075_v10, %v2048_v37  ;;  %v2338_v25 = vadd.f32 %v2337_v2, %v2336_v13  ;;  %vm2060_vm10 = vcmp.eq.f32.partialorder %v2059_v30, 8.507059e+37  ;;  %v1723_v51 = vrot.slane %v1722_v45, 1 }
 0x376   : > { %v2058_v26 = vsel %vm2057_vm9, %v2989_v22, %v2054_v20  ;;  %v2993_v47 = vpop.eup %2992  ;;  %v2307_v42 = vadd.f32 %v2306_v6, %v4073_v41  ;;  %v2320_v46 = vrot.slane %v4149_v8, 1  ;;  %v1869_v7 = vrot.slane %v1868_v23, 1 }
 0x377   : > { %v2063_v21 = vsel %vm2060_vm10, %v2062_v49, %v2058_v26  ;;  %2135 = vst.msk [vmem:[%s3887_s20 + $0x50] sm:$0xff] %vm1149_vm2, %v4173_v53  ;;  %v2326_v10 = vadd.f32 %v2325_v5, %v4137_v12  ;;  %v2066_v34 = vmul.f32 %v2993_v47, %v4160_v48  ;;  %v1873_v40 = vadd.f32 %v1872_v15, %v1871_v27 }
 0x378   : > { %v4184_v28 = vmul.f32 %v4087_v19, %v2063_v21  ;;  %v4187_v13 = vadd.f32 %v1869_v7, %v1868_v23  ;;  %v1724_v63 = vmax.f32 %v1722_v45, %v1723_v51  ;;  %v2333_v41 = vadd.f32 %v2332_v54, %v4140_v39  ;;  %v4213_v45 = vpop.permute.xlu0 %2253 }
 0x379   : > { %v2345_v6 = vadd.f32 %v2344_v55, %v2343_v1  ;;  %v2314_v58 = vadd.f32 %v2313_v50, %v4078_v17  ;;  %v2067_v0 = vsub.f32 1.0, %v2066_v34  ;;  %v1874_v9 = vrot.slane %v1873_v40, 2 }
 0x37a   : > { %v2339_v12 = vrot.slane %v2338_v25, 2  ;;  %2136 = vst.msk [vmem:[%s3887_s20 + $0x58] sm:$0xff] %vm1149_vm2, %v4184_v28  ;;  %v2292_v19 = vmul.f32 %v2252_v38, %v4083_v14  ;;  %v2076_v22 = vand.u32 2147483648, %v4160_v48  ;;  %2994 = vrcp.f32 %v4187_v13 }
 0x37b   : > { %v2321_v39 = vadd.f32 %v2320_v46, %v4149_v8  ;;  %v2068_v5 = vmul.f32 %v2993_v47, %v2067_v0  ;;  %vm2071_vm11 = vweird.f32 %v2993_v47  ;;  %v2074_v31 = vand.u32 2147483647, %v4160_v48  ;;  %v2256_v0 = vpop.permute.xlu1 %2255 }
 0x37c   : > { %v1875_v35 = vadd.f32 %v1874_v9, %v1873_v40  ;;  %v1740_v17 = vsub.f32 %v4110_v59, %v1724_v63  ;;  %v2327_v50 = vrot.slane %v2326_v10, 1  ;;  %v2334_v62 = vrot.slane %v2333_v41, 1 }
 0x37d   : > { %v2346_v54 = vrot.slane %v2345_v6, 2  ;;  %v2069_v2 = vadd.f32 %v2993_v47, %v2068_v5  ;;  %vm2070_vm12 = vweird.f32 %v4160_v48  ;;  %v2340_v32 = vadd.f32 %v2339_v12, %v2338_v25 }
 0x37e   : > { %v1876_v14 = vrot.slane %v1875_v35, 1  ;;  %vm2072_vm13 = vmor %vm2070_vm12, %vm2071_vm11  ;;  %v2077_v52 = vor.u32 1.1754944e-38, %v2076_v22  ;;  %v1771_v3 = vmul.f32 1.442695, %v1740_v17  ;;  %v2350_v8 = vsel %vm1149_vm2, %v2292_v19, 0.0 }
 0x37f   : > { %vm2437_vm14 = vcmask 1041409   ;;  %v2073_v11 = vsel %vm2072_vm13, %v2993_v47, %v2069_v2  ;;  %vm2075_vm15 = vcmp.eq.f32.partialorder %v2074_v31, 8.507059e+37  ;;  %v2351_v36 = vrot.slane %v2350_v8, 4 }
 0x380   : > { %v4204_v1 = vadd.f32 %v1876_v14, %v1875_v35  ;;  %v2995_v59 = vpop.eup %2994  ;;  %v2078_v4 = vsel %vm2075_vm15, %v2077_v52, %v2073_v11  ;;  %2996 = vpow2.f32 %v1771_v3  ;;  %v2347_v56 = vadd.f32 %v2346_v54, %v2345_v6  ;;  %v2260_v17 = vpop.permute.xlu0 %2259 }
 0x381   : > { %v2438_v48 = vsel %vm2437_vm14, %v2314_v58, %v2307_v42  ;;  %v4208_v44 = vmul.f32 %v4107_v57, %v2078_v4  ;;  %v2081_v43 = vmul.f32 %v2995_v59, %v4187_v13  ;;  %v2328_v61 = vadd.f32 %v2327_v50, %v2326_v10 }
 0x382   : > { %2998 = vrcp.f32 %v4204_v1  ;;  %v2089_v30 = vand.u32 2147483647, %v4187_v13  ;;  %v2335_v16 = vadd.f32 %v2334_v62, %v2333_v41  ;;  %v2341_v60 = vrot.slane %v2340_v32, 1 }
 0x383   : > { %v2352_v27 = vadd.f32 %v2351_v36, %v2350_v8  ;;  %v2082_v55 = vsub.f32 1.0, %v2081_v43  ;;  %v2091_v37 = vand.u32 2147483648, %v4187_v13  ;;  %vm2439_vm1 = vcmask 1042434   ;;  %2137 = vst.msk [vmem:[%s3887_s20 + $0x60] sm:$0xff] %vm1149_vm2, %v4208_v44  ;;  %v2262_v36 = vpop.permute.xlu1 %2261 }
 0x384   : > { %vm2441_vm3 = vcmask 1043459   ;;  %v2348_v57 = vrot.slane %v2347_v56, 1  ;;  %v2440_v49 = vsel %vm2439_vm1, %v2321_v39, %v2438_v48  ;;  %vm2086_vm4 = vweird.f32 %v2995_v59  ;;  %v2258_v39 = vpop.permute.xlu2 %2257 }
 0x385   : > { %v2353_v20 = vrot.slane %v2352_v27, 2  ;;  %v2083_v23 = vmul.f32 %v2995_v59, %v2082_v55  ;;  %v2442_v15 = vsel %vm2441_vm3, %v2328_v61, %v2440_v49  ;;  %vm2443_vm5 = vcmask 1044484  }
 0x386   : > { %v4221_v25 = vpop.eup %2996  ;;  %vm2085_vm6 = vweird.f32 %v4187_v13  ;;  %v2342_v26 = vadd.f32 %v2341_v60, %v2340_v32  ;;  %v2444_v47 = vsel %vm2443_vm5, %v2335_v16, %v2442_v15  ;;  %vm2090_vm7 = vcmp.eq.f32.partialorder %v2089_v30, 8.507059e+37 }
 0x387   : > { %v2354_v51 = vadd.f32 %v2353_v20, %v2352_v27  ;;  %v2084_v46 = vadd.f32 %v2995_v59, %v2083_v23  ;;  %v2092_v21 = vor.u32 1.1754944e-38, %v2091_v37  ;;  %v1878_v7 = vsel %vm1149_vm2, %v4221_v25, 0.0  ;;  %vm2087_vm8 = vmor %vm2085_vm6, %vm2086_vm4 }
 0x388   : > { %v2999_v42 = vpop.eup %2998  ;;  %v1879_v34 = vrot.slane %v1878_v7, 4  ;;  %v2349_v40 = vadd.f32 %v2348_v57, %v2347_v56  ;;  %vm2445_vm9 = vcmask 1045509   ;;  %v2104_v13 = vand.u32 2147483647, %v4204_v1  ;;  %v2266_v48 = vpop.permute.xlu0 %2265 }
 0x389   : > { %v2096_v10 = vmul.f32 %v2999_v42, %v4204_v1  ;;  %v2088_v63 = vsel %vm2087_vm8, %v2995_v59, %v2084_v46  ;;  %v2355_v41 = vrot.slane %v2354_v51, 1  ;;  %vm2447_vm10 = vcmask 1046534  }
 0x38a   : > { %v2093_v6 = vsel %vm2090_vm7, %v2092_v21, %v2088_v63  ;;  %v1880_v58 = vadd.f32 %v1879_v34, %v1878_v7  ;;  %vm2449_vm11 = vcmask 1047559   ;;  %v2106_v12 = vand.u32 2147483648, %v4204_v1 }
 0x38b   : > { %v2097_v38 = vsub.f32 1.0, %v2096_v10  ;;  %v2094_v9 = vmul.f32 %v4135_v29, %v2093_v6  ;;  %v2356_v19 = vadd.f32 %v2355_v41, %v2354_v51  ;;  %v2446_v22 = vsel %vm2445_vm9, %v2342_v26, %v2444_v47 }
 0x38c   : > { %vm2101_vm12 = vweird.f32 %v2999_v42  ;;  %v1881_v31 = vrot.slane %v1880_v58, 2  ;;  %v2448_v35 = vsel %vm2447_vm10, %v2349_v40, %v2446_v22  ;;  %vm2100_vm13 = vweird.f32 %v4204_v1  ;;  %v2264_v4 = vpop.permute.xlu2 %2263 }
 0x38d   : > { %v2098_v5 = vmul.f32 %v2999_v42, %v2097_v38  ;;  %v2450_v50 = vsel %vm2449_vm11, %v2356_v19, %v2448_v35  ;;  %2138 = vst.msk [vmem:[%s3887_s20 + $0x68] sm:$0xff] %vm1149_vm2, %v2094_v9  ;;  %vm2102_vm15 = vmor %vm2100_vm13, %vm2101_vm12  ;;  %v2107_v54 = vor.u32 1.1754944e-38, %v2106_v12  ;;  %vm2105_vm4 = vcmp.eq.f32.partialorder %v2104_v13, 8.507059e+37  ;;  %v2268_v35 = vpop.permute.xlu1 %2267 }
 0x38e   : > { %v1882_v29 = vadd.f32 %v1881_v31, %v1880_v58  ;;  %2775 = vmatmul.msk.f32.vlgmr.msrb.gmra.mxu1 %vm1149_vm2, %v2450_v50  ;;  %v2294_v32 = vmul.f32 %v2256_v0, %v4143_v33  ;;  %v2295_v3 = vmul.f32 %v2258_v39, %v4173_v53  ;;  %v2293_v1 = vmul.f32 %v4213_v45, %v4113_v24 }
 0x38f   : > { %v2099_v62 = vadd.f32 %v2999_v42, %v2098_v5  ;;  %v2296_v59 = vmul.f32 %v2260_v17, %v4184_v28  ;;  %v2297_v56 = vmul.f32 %v2262_v36, %v4208_v44  ;;  %v2298_v43 = vmul.f32 %v2264_v4, %v2094_v9 }
 0x390   : > { %v1883_v14 = vrot.slane %v1882_v29, 1  ;;  %v2364_v33 = vsel %vm1149_vm2, %v2294_v32, 0.0  ;;  %v2371_v53 = vsel %vm1149_vm2, %v2295_v3, 0.0  ;;  %v2357_v61 = vsel %vm1149_vm2, %v2293_v1, 0.0 }
 0x391   : > { %v2103_v2 = vsel %vm2102_vm15, %v2999_v42, %v2099_v62  ;;  %v2378_v30 = vsel %vm1149_vm2, %v2296_v59, 0.0  ;;  %v2365_v24 = vrot.slane %v2364_v33, 4  ;;  %v2385_v28 = vsel %vm1149_vm2, %v2297_v56, 0.0 }
 0x392   : > { %v2108_v52 = vsel %vm2105_vm4, %v2107_v54, %v2103_v2  ;;  %v1884_v11 = vadd.f32 %v1883_v14, %v1882_v29  ;;  %v2372_v16 = vrot.slane %v2371_v53, 4  ;;  %v2392_v44 = vsel %vm1149_vm2, %v2298_v43, 0.0 }
 0x393   : > { %v2109_v8 = vmul.f32 %v4164_v18, %v2108_v52  ;;  %v2358_v27 = vrot.slane %v2357_v61, 4  ;;  %v2379_v45 = vrot.slane %v2378_v30, 4  ;;  %v2386_v37 = vrot.slane %v2385_v28, 4 }
 0x394   : > { %3000 = vrcp.f32 %v1884_v11  ;;  %v2366_v20 = vadd.f32 %v2365_v24, %v2364_v33  ;;  %v2393_v49 = vrot.slane %v2392_v44, 4  ;;  %v2373_v23 = vadd.f32 %v2372_v16, %v2371_v53 }
 0x395   : > { %2139 = vst.msk [vmem:[%s3887_s20 + $0x70] sm:$0xff] %vm1149_vm2, %v2109_v8  ;;  %v2299_v18 = vmul.f32 %v2266_v48, %v2109_v8  ;;  %v2359_v51 = vadd.f32 %v2358_v27, %v2357_v61  ;;  %v2380_v47 = vadd.f32 %v2379_v45, %v2378_v30  ;;  %v2121_v42 = vand.u32 2147483648, %v1884_v11 }
 0x396   : > { %v2387_v46 = vadd.f32 %v2386_v37, %v2385_v28  ;;  %v2119_v7 = vand.u32 2147483647, %v1884_v11  ;;  %v2367_v10 = vrot.slane %v2366_v20, 2  ;;  %v2394_v34 = vadd.f32 %v2393_v49, %v2392_v44 }
 0x397   : > { %v2399_v55 = vsel %vm1149_vm2, %v2299_v18, 0.0  ;;  %v2374_v40 = vrot.slane %v2373_v23, 2  ;;  %vm2115_vm7 = vweird.f32 %v1884_v11  ;;  %v2360_v41 = vrot.slane %v2359_v51, 2 }
 0x398   : > { %v2400_v26 = vrot.slane %v2399_v55, 4  ;;  %v2381_v6 = vrot.slane %v2380_v47, 2  ;;  %v2122_v38 = vor.u32 1.1754944e-38, %v2121_v42  ;;  %vm2120_vm12 = vcmp.eq.f32.partialorder %v2119_v7, 8.507059e+37 }
 0x399   : > { %v2388_v0 = vrot.slane %v2387_v46, 2  ;;  %v2368_v9 = vadd.f32 %v2367_v10, %v2366_v20  ;;  %v2395_v19 = vrot.slane %v2394_v34, 2  ;;  %v2375_v22 = vadd.f32 %v2374_v40, %v2373_v23 }
 0x39a   : > { %v3001_v60 = vpop.eup %3000  ;;  %v2401_v13 = vadd.f32 %v2400_v26, %v2399_v55  ;;  %v2361_v31 = vadd.f32 %v2360_v41, %v2359_v51  ;;  %v2382_v17 = vadd.f32 %v2381_v6, %v2380_v47 }
 0x39b   : > { %v2111_v57 = vmul.f32 %v3001_v60, %v1884_v11  ;;  %vm2116_vm6 = vweird.f32 %v3001_v60  ;;  %v2389_v62 = vadd.f32 %v2388_v0, %v2387_v46  ;;  %v2369_v29 = vrot.slane %v2368_v9, 1 }
 0x39c   : > { %vm2117_vm8 = vmor %vm2115_vm7, %vm2116_vm6  ;;  %v2402_v5 = vrot.slane %v2401_v13, 2  ;;  %v2396_v54 = vadd.f32 %v2395_v19, %v2394_v34  ;;  %v2376_v2 = vrot.slane %v2375_v22, 1  ;;  %v2362_v52 = vrot.slane %v2361_v31, 1 }
 0x39d   : > { %v2112_v15 = vsub.f32 1.0, %v2111_v57  ;;  %v2383_v3 = vrot.slane %v2382_v17, 1  ;;  %v2390_v11 = vrot.slane %v2389_v62, 1  ;;  %v2370_v36 = vadd.f32 %v2369_v29, %v2368_v9 }
 0x39e   : > { %v2403_v14 = vadd.f32 %v2402_v5, %v2401_v13  ;;  %v2377_v59 = vadd.f32 %v2376_v2, %v2375_v22  ;;  %v2363_v56 = vadd.f32 %v2362_v52, %v2361_v31 }
 0x39f   : > { %v2113_v21 = vmul.f32 %v3001_v60, %v2112_v15  ;;  %v2384_v48 = vadd.f32 %v2383_v3, %v2382_v17  ;;  %v2391_v43 = vadd.f32 %v2390_v11, %v2389_v62 }
 0x3a0   : > { %v2404_v4 = vrot.slane %v2403_v14, 1  ;;  %v2451_v61 = vsel %vm2437_vm14, %v2370_v36, %v2363_v56 }
 0x3a1   : > { %v2114_v63 = vadd.f32 %v3001_v60, %v2113_v21  ;;  %v2452_v24 = vsel %vm2439_vm1, %v2377_v59, %v2451_v61 }
 0x3a2   : > { %v2405_v30 = vadd.f32 %v2404_v4, %v2403_v14  ;;  %v2453_v16 = vsel %vm2441_vm3, %v2384_v48, %v2452_v24 }
 0x3a3   : > { %v2118_v58 = vsel %vm2117_vm8, %v3001_v60, %v2114_v63  ;;  %v2454_v44 = vsel %vm2443_vm5, %v2391_v43, %v2453_v16 }
 0x3a4   : > { %v2123_v12 = vsel %vm2120_vm12, %v2122_v38, %v2118_v58 }
 0x3a5   : > { %v2124_v39 = vmul.f32 %v4221_v25, %v2123_v12  ;;  %v2397_v25 = vrot.slane %v2396_v54, 1 }
 0x3a7   : > { %v2300_v50 = vmul.f32 %v2268_v35, %v2124_v39  ;;  %2140 = vst.msk [vmem:[%s3887_s20 + $0x78] sm:$0xff] %vm1149_vm2, %v2124_v39  ;;  %v2398_v53 = vadd.f32 %v2397_v25, %v2396_v54  ;;  %s3022_s20 = scalar_lea.hbm %s4343_s10, 256 }
 0x3a8   : > { %p3024_p2 = scmp.lt.s32.totalorder %s3022_s20, %s3018_s1 }
 0x3a9   : > { %v2406_v32 = vsel %vm1149_vm2, %v2300_v50, 0.0  ;;  %v2455_v27 = vsel %vm2445_vm9, %v2398_v53, %v2454_v44 }
 0x3aa   : > { %v2407_v8 = vrot.slane %v2406_v32, 4  ;;  %v2456_v45 = vsel %vm2447_vm10, %v2405_v30, %v2455_v27  ;;  %p3025_p3 = por %p3024_p2, %p3023_p1 }
 0x3ac   : > { %v2408_v1 = vadd.f32 %v2407_v8, %v2406_v32  ;;  %p3026_p5 = pnand %p3025_p3, %p3021_p0 }
 0x3ae   : > { %v2409_v33 = vrot.slane %v2408_v1, 2 }
 0x3b0   : > { %v2410_v18 = vadd.f32 %v2409_v33, %v2408_v1 }
 0x3b2   : > { %v2411_v28 = vrot.slane %v2410_v18, 1 }
 0x3b4   : > { %v2412_v60 = vadd.f32 %v2411_v28, %v2410_v18 }
 0x3b6   : > { %v2457_v55 = vsel %vm2449_vm11, %v2412_v60, %v2456_v45 }
 0x3b7   : > { %2776 = vmatmul.msk.f32.gmra.mxu1 %vm1149_vm2, %v2457_v55 }
 0x3b8   : > { %3029 = shalt.err (!%p3026_p5)
}
 0x3b9   : > { %s3120_s24 = smov 128   ;;  %s3121_s12 = smov 8   ;;  %v2937_v37 = vld [vmem:[%s4341_s8] ss:$0 sm:$0xff]  ;;  %v507_v15 = vld [vmem:[%s3255_s29 + $0x8] sm:$0xff] }
 0x3ba   : > { %2795 = dma.vmem_to_hbm [thread:$0]  (%p3217_p4), %s2529_s0, 2048, %s2531_s28, %s2495_s11, %s3120_s24, %s3120_s24, %s3121_s12  }
 0x3bb   : > { %s2685_s1 = sshll.u32 %s3858_s30, 4  ;;  %v506_v57 = vld [vmem:[%s3255_s29] sm:$0xff]  ;;  %s2788_s5 = sshll.u32 %s3104_s16, 4 }
 0x3bc   : > { %s424_s4 = scalar_lea.vmem [#allocation3], %s2685_s1  ;;  %s2508_s19 = scalar_lea.hbm %s4342_s9, %s2788_s5 }
 0x3bd   : > { %s2509_s0 = sshll.u32 %s424_s4, 4  ;;  %s2511_s28 = sshll.u32 %s2508_s19, 4  ;;  %s2510_s0 = int_to_ptr.vmem [resolvable:$true] %s2509_s0  ;;  %s2512_s28 = int_to_ptr.hbm [resolvable:$true] %s2511_s28 }
 0x3be   : > { %s2490_s11 = scalar_lea.sflag [#allocation4], %s3858_s30  ;;  %s3044_s20 = sshra.s32 %s2512_s28, 4  ;;  %s3045_s20 = int_to_ptr.hbm [resolvable:$true] %s3044_s20 }
 0x3bf   : > { %s3046_s2 = scalar_lea.hbm %s3045_s20, 16  ;;  %s3050_s29 = scalar_lea.hbm %s4342_s9, 32 }
 0x3c0   : > { %p3047_p6 = scmp.ne.s32.totalorder %s3045_s20, %s3046_s2  ;;  %p3051_p10 = scmp.lt.s32.totalorder %s3045_s20, %s4342_s9 }
 0x3c1   : > { %p3052_p11 = scmp.lt.s32.totalorder %s3050_s29, %s3046_s2 }
 0x3c2   : > { %p3048_p7 = pnand %p3047_p6, %p3217_p4 }
 0x3c3   : > { %p3053_p12 = por %p3052_p11, %p3051_p10 }
 0x3c4   : > { %p3049_p9 = pneg %p3048_p7 }
 0x3c6   : > { %p3054_p13 = pnand %p3053_p12, %p3049_p9 }
 0x40b   : > { %v2479_v20 = vpop.f32.mrf.mxu1 }
 0x40c   : > { %v2480_v49 = vadd.f32 %v2937_v37, %v2479_v20 }
 0x40e   : > { %v2485_v23 = vadd.f32 %v2480_v49, %v506_v57 }
 0x410   : > { %2487 = vst.msk [vmem:[%s424_s4] sm:$0xff] %vm471_vm0, %v2485_v23 }
 0x434   : > { %v2482_v26 = vpop.f32.mrf.mxu1 }
 0x435   : > { %v2483_v51 = vadd.f32 %v2937_v37, %v2482_v26 }
 0x437   : > { %v2486_v47 = vadd.f32 %v2483_v51, %v507_v15 }
 0x439   : > { %2488 = vst.msk [vmem:[%s424_s4 + $0x8] sm:$0xff] %vm471_vm0, %v2486_v47 }
 0x43a   : > { %3057 = shalt.err (!%p3054_p13)
}
 0x43b   : > { %2794 = dma.vmem_to_hbm [thread:$0]  (%p3217_p4), %s2510_s0, 256, %s2512_s28, %s2490_s11, %s3120_s24, %s3120_s24, %s3121_s12  }
 0x43c PF: > { %p2805_p0 = scmp.ge.s32.totalorder %s3112_s18, 2  ;;  %s2545_s30 = sand.u32 1, %s3092_s13  }
 0x43d   : > { %s2546_s4 = scalar_lea.sflag [#allocation4], %s2545_s30 }
 0x43e   : > { %p2799_p1 = pnand %p2805_p0, %p3224_p8 }
 0x440   : > { %p2800_p2 = pneg %p2799_p1 }
 0x442   : > { %3083 = dma.done.wait (%p2800_p2), %s2546_s4, 256  }
 0x443   : > { %3085 = vsyncadd (%p2800_p2), %s2546_s4, 4294967040  ;;  %s2556_s22 = scalar_lea.sflag [#allocation6], %s2545_s30 }
 0x444   : > { %3087 = dma.done.wait (%p2800_p2), %s2556_s22, 2048  }
 0x445   : > { %3089 = vsyncadd (%p2800_p2), %s2556_s22, 4294965248  ;;  %s27_s18 = sadd.s32 1, %s3112_s18   ;;  %s4362_s13 = smov %s3096_s14 }
 0x446   : > { %p24_p3 = scmp.ge.s32.totalorder %s27_s18, 4   ;;  %s4363_s14 = smov %s3100_s15 }
 0x447   : > { %s4364_s15 = smov %s3230_s26  ;;  %s4365_s16 = smov %s3108_s17 }
 0x448   : > { %s4366_s17 = smov %s4368_s21  ;;  %26 = sbr.rel (!%p24_p3) target bundleno = 13 (0xd), region = 120 }
 0x44d   :  { %2562 = vsyncpa [#allocation4], 1 }
 0x44e   :  { %2564 = vsyncpa [#allocation4 + $0x1], 1 }
 0x44f   :  { %2565 = vsyncpa [#allocation6], 1 }
 0x450   :  { %2567 = vsyncpa [#allocation6 + $0x1], 1 }

</bundles_post_ra>
